<compile_context>
chip_gen: v7x
topology: tpu7x:2x2x1
jax: 0.10.0
libtpu: 0.0.40
codegen_flags: <defaults>
</compile_context>

<pallas_src>
import functools
import math

import numpy as np
import jax
import jax.numpy as jnp
from jax.experimental import pallas as pl
from jax.experimental.pallas import tpu as pltpu


def _round_up(x, m):
    return ((x + m - 1) // m) * m


@functools.lru_cache(None)
def _physical_vmem_bytes():
    try:
        return int(pltpu.get_tpu_info().vmem_capacity_bytes)
    except Exception:
        return 64 * 2 ** 20          # conservative default (v7x per-core)


def _vmem_budget():
    # Leave ~25% headroom for compiler-internal scratch / semaphores.
    return max(32 * 2 ** 20, (_physical_vmem_bytes() * 3) // 4)


def _default_tiles():
    if _physical_vmem_bytes() >= 100 * 2 ** 20:     # v5e / v6e: 128 MiB VMEM
        return dict(row_tile=512, hidden_tile=1024, q_tile=512)
    return dict(row_tile=256, hidden_tile=512, q_tile=256)   # v7x: 64 MiB


def _align_for_dtype(dtype):
    return {4: 8, 2: 16, 1: 32}.get(jnp.dtype(dtype).itemsize, 8)


def _pick_tile(n, max_tile, align=8):
    """Balanced row tiling: tile size <= max_tile, waste at most one tile-row."""
    n_a = _round_up(max(n, 1), align)
    if n_a <= max_tile:
        return n_a, n_a
    n_tiles = -(-n_a // max_tile)
    t = _round_up(-(-n_a // n_tiles), align)
    return t, t * n_tiles


def _pick_hidden_tile(hp, max_tile):
    """Largest multiple of 128 that divides hp (hp is a multiple of 128)."""
    best = 128
    t = 128
    while t <= min(max_tile, hp):
        if hp % t == 0:
            best = t
        t += 128
    return best


def _const_spec(shape, n_args):
    # Constant-index block: no pipelining needed -> single buffer in VMEM.
    zeros = (0,) * len(shape)
    maps = {1: (lambda i: zeros), 2: (lambda i, j: zeros), 3: (lambda i, j, k: zeros)}
    return pl.BlockSpec(shape, maps[n_args], pipeline_mode=pl.Buffered(1))


# ---------------------------------------------------------------------------
# Fused multi-head attention + residual + LayerNorm.
# Grid = (batch, Lq tiles), both parallel.
# ---------------------------------------------------------------------------
def mha_ln_kernel(xq_ref, xkv_ref, mask_ref, wq_ref, bq_ref, wkv_ref, bkv_ref,
                  wo_ref, bo_ref, g_ref, beta_ref, o_ref,
                  *, n_heads, dph, causal, approx_recip):
    xq = xq_ref[0]                       # [tq, D]
    xkv = xkv_ref[0]                     # [Lk, D]
    tq, D = xq.shape
    Lk = xkv.shape[0]
    in_dt = xq.dtype

    # Fused projections: Q from the query tile, packed K|V in ONE wide matmul.
    q = jnp.dot(xq, wq_ref[...], preferred_element_type=jnp.float32) + bq_ref[...]
    kv = jnp.dot(xkv, wkv_ref[...], preferred_element_type=jnp.float32) + bkv_ref[...]
    k, v = kv[:, :D], kv[:, D:]          # static (lane-aligned for D % 128 == 0)

    # Head-batched layout [n_heads, L, dph]; matmul inputs in the model dtype,
    # accumulation stays f32 via preferred_element_type.
    qh = jnp.transpose(q.astype(in_dt).reshape(tq, n_heads, dph), (1, 0, 2))
    kh = jnp.transpose(k.astype(in_dt).reshape(Lk, n_heads, dph), (1, 0, 2))
    vh = jnp.transpose(v.astype(in_dt).reshape(Lk, n_heads, dph), (1, 0, 2))

    logits = jnp.einsum("hqd,hkd->hqk", qh, kh,
                        preferred_element_type=jnp.float32)   # [h, tq, Lk] f32

    # Masks generated in-kernel: causal from iota, key mask from a [1,Lk] row.
    valid = jnp.broadcast_to(mask_ref[0], (tq, Lk)) > 0.0
    if causal:
        row = jax.lax.broadcasted_iota(jnp.int32, (tq, Lk), 0) + pl.program_id(1) * tq
        col = jax.lax.broadcasted_iota(jnp.int32, (tq, Lk), 1)
        valid = jnp.logical_and(valid, col <= row)
    # masked_fill(-1e20) happens BEFORE the /sqrt(dph), matching the module.
    logits = jnp.where(valid[None], logits, -1e20) * (1.0 / math.sqrt(dph))

    logits = logits - jnp.max(logits, axis=-1, keepdims=True)
    p = jnp.exp(logits)
    denom = jnp.sum(p, axis=-1, keepdims=True)
    # TODO(synk): attention dropout is identity at p=0 (module default).
    ctx = jnp.einsum("hqk,hkd->hqd", p.astype(in_dt), vh,
                     preferred_element_type=jnp.float32)
    # Normalize after PV (linear): reciprocal goes to the EUP slot in low-
    # precision mode; exact reciprocal in f32 mode to keep parity tight.
    ctx = ctx * pl.reciprocal(denom, approx=approx_recip)
    ctx = jnp.transpose(ctx, (1, 0, 2)).reshape(tq, D)

    out = jnp.dot(ctx.astype(wo_ref.dtype), wo_ref[...],
                  preferred_element_type=jnp.float32) + bo_ref[...]

    # Fused residual add + LayerNorm epilogue (nn.LayerNorm default eps=1e-5).
    y = out + xq.astype(jnp.float32)
    mean = jnp.mean(y, axis=-1, keepdims=True)
    cen = y - mean
    var = jnp.mean(cen * cen, axis=-1, keepdims=True)
    yn = cen * jax.lax.rsqrt(var + 1e-5)
    o_ref[0] = (yn * g_ref[...] + beta_ref[...]).astype(o_ref.dtype)


def mha_ln_block(x_q, x_kv, mask_1k, wq, bq, wkv, bkv, wo, bo, ln_g, ln_b,
                 *, n_heads, causal, q_tile=None):
    """x_q: [B,Lq,D]; x_kv: [B,Lk,D]; mask_1k: [B,1,Lk] (>0 = attend).
    Returns LayerNorm(x_q + MHA(x_q, x_kv))."""
    B, Lq, D = x_q.shape
    Lk = x_kv.shape[1]
    dph = D // n_heads
    q_tile = q_tile or _default_tiles()["q_tile"]
    tq, lq_p = _pick_tile(Lq, q_tile, _align_for_dtype(x_q.dtype))
    if lq_p != Lq:
        x_q = jnp.pad(x_q, ((0, 0), (0, lq_p - Lq), (0, 0)))
    n_q = lq_p // tq

    asize = jnp.dtype(x_q.dtype).itemsize
    wsize = jnp.dtype(wq.dtype).itemsize
    need = ((2 * tq * D + 2 * Lk * D + 2 * tq * D) * asize          # act blocks
            + (4 * D * D + 6 * D) * wsize + 2 * Lk * 4              # weights+mask
            + 4 * (3 * tq * D + 3 * Lk * D + 3 * n_heads * tq * Lk))  # f32 temps
    vmem_limit = int(min(max(need * 3 // 2, 32 * 2 ** 20), _vmem_budget()))

    steps = B * n_q
    cost = pl.CostEstimate(
        flops=int(steps * (2 * tq * D * D + 4 * Lk * D * D
                           + 4 * tq * Lk * D + 2 * tq * D * D)),
        transcendentals=int(steps * (n_heads * tq * Lk + tq)),
        bytes_accessed=int(asize * (2 * B * lq_p * D + steps * Lk * D)
                           + wsize * B * (4 * D * D + 6 * D)),
    )

    kernel = functools.partial(
        mha_ln_kernel, n_heads=n_heads, dph=dph, causal=causal,
        approx_recip=bool(jnp.dtype(x_q.dtype) != jnp.dtype(jnp.float32)))

    out = pl.pallas_call(
        kernel,
        out_shape=jax.ShapeDtypeStruct((B, lq_p, D), x_q.dtype),
        grid_spec=pltpu.PrefetchScalarGridSpec(
            num_scalar_prefetch=0,
            grid=(B, n_q),
            in_specs=[
                pl.BlockSpec((1, tq, D), lambda b, i: (b, i, 0)),   # query tile
                pl.BlockSpec((1, Lk, D), lambda b, i: (b, 0, 0)),   # kv slab
                pl.BlockSpec((1, 1, Lk), lambda b, i: (b, 0, 0)),   # key mask row
                _const_spec((D, D), 2), _const_spec((1, D), 2),     # Wq, bq
                _const_spec((D, 2 * D), 2), _const_spec((1, 2 * D), 2),  # Wkv, bkv
                _const_spec((D, D), 2), _const_spec((1, D), 2),     # Wo, bo
                _const_spec((1, D), 2), _const_spec((1, D), 2),     # LN gamma/beta
            ],
            out_specs=pl.BlockSpec((1, tq, D), lambda b, i: (b, i, 0)),
        ),
        compiler_params=pltpu.CompilerParams(
            dimension_semantics=("parallel", "parallel"),
            vmem_limit_bytes=vmem_limit),
        cost_estimate=cost,
    )(x_q, x_kv, mask_1k, wq, bq, wkv, bkv, wo, bo, ln_g, ln_b)
    return out[:, :Lq]


# ---------------------------------------------------------------------------
# Fused FFN + residual + LayerNorm: LN(x + lin2(relu(lin1(x)))).
# Grid = (row tiles [parallel], hidden tiles [arbitrary, reduction]).
# ---------------------------------------------------------------------------
def ffn_ln_kernel(x_ref, w1_ref, b1_ref, w2_ref, b2_ref, g_ref, beta_ref,
                  o_ref, acc_ref, *, d_true):
    k = pl.program_id(1)

    @pl.when(k == 0)
    def _():
        acc_ref[...] = jnp.zeros_like(acc_ref)

    # First matmul restricted to this hidden-dim tile; ReLU is elementwise so
    # it can be applied per hidden tile before the accumulating second matmul.
    h = jnp.dot(x_ref[...], w1_ref[...], preferred_element_type=jnp.float32)
    h = jnp.maximum(h + b1_ref[...], 0.0)
    # TODO(synk): relu-dropout is identity at p=0 (module default).
    acc_ref[...] += jnp.dot(h.astype(w2_ref.dtype), w2_ref[...],
                            preferred_element_type=jnp.float32)

    @pl.when(k == pl.num_programs(1) - 1)
    def _():
        # Fused residual add + LayerNorm over the TRUE feature dim (padded
        # lanes are zero and masked out of the statistics).
        y = acc_ref[...] + b2_ref[...] + x_ref[...].astype(jnp.float32)
        lane = jax.lax.broadcasted_iota(jnp.int32, y.shape, 1)
        feat = lane < d_true
        inv_d = 1.0 / d_true
        mean = jnp.sum(jnp.where(feat, y, 0.0), axis=-1, keepdims=True) * inv_d
        cen = jnp.where(feat, y - mean, 0.0)
        var = jnp.sum(cen * cen, axis=-1, keepdims=True) * inv_d
        yn = cen * jax.lax.rsqrt(var + 1e-5)
        o_ref[...] = (yn * g_ref[...] + beta_ref[...]).astype(o_ref.dtype)


def ffn_ln_block(x, w1p, b1p, w2p, b2p, g_p, beta_p, *, d_true,
                 row_tile=None, hidden_tile=None):
    """x: [...,D]; padded/packed weights come pre-built from pack_params."""
    orig_shape = x.shape
    D = d_true
    Dp, Hp = w1p.shape
    x2 = x.reshape(-1, D)
    rows = x2.shape[0]
    tiles = _default_tiles()
    row_tile = row_tile or tiles["row_tile"]
    hidden_tile = hidden_tile or tiles["hidden_tile"]
    tm, rows_p = _pick_tile(rows, row_tile, _align_for_dtype(x.dtype))
    tk = _pick_hidden_tile(Hp, hidden_tile)
    if rows_p != rows or Dp != D:
        x2 = jnp.pad(x2, ((0, rows_p - rows), (0, Dp - D)))

    asize = jnp.dtype(x2.dtype).itemsize
    wsize = jnp.dtype(w1p.dtype).itemsize
    need = (2 * tm * Dp * asize                          # x tiles (double buf)
            + 2 * (Dp * tk + tk + tk * Dp) * wsize       # w1/b1/w2 tiles
            + 3 * Dp * wsize                             # b2, gamma, beta
            + 2 * tm * Dp * asize                        # out tiles
            + tm * Dp * 4 + tm * tk * 4)                 # f32 acc + hidden temp
    vmem_limit = int(min(max(need * 3 // 2, 32 * 2 ** 20), _vmem_budget()))

    n_row = rows_p // tm
    cost = pl.CostEstimate(
        flops=int(4 * rows_p * Dp * Hp),
        transcendentals=int(rows_p),
        bytes_accessed=int(2 * rows_p * Dp * asize
                           + n_row * (2 * Dp * Hp + Hp + 3 * Dp) * wsize),
    )

    out = pl.pallas_call(
        functools.partial(ffn_ln_kernel, d_true=D),
        out_shape=jax.ShapeDtypeStruct((rows_p, Dp), x.dtype),
        grid_spec=pltpu.PrefetchScalarGridSpec(
            num_scalar_prefetch=0,
            grid=(n_row, Hp // tk),
            in_specs=[
                pl.BlockSpec((tm, Dp), lambda i, k: (i, 0)),   # x (also residual)
                pl.BlockSpec((Dp, tk), lambda i, k: (0, k)),   # W1 hidden tile
                pl.BlockSpec((1, tk), lambda i, k: (0, k)),    # b1 hidden tile
                pl.BlockSpec((tk, Dp), lambda i, k: (k, 0)),   # W2 hidden tile
                _const_spec((1, Dp), 2),                       # b2
                _const_spec((1, Dp), 2),                       # LN gamma
                _const_spec((1, Dp), 2),                       # LN beta
            ],
            out_specs=pl.BlockSpec((tm, Dp), lambda i, k: (i, 0)),
            scratch_shapes=[pltpu.VMEM((tm, Dp), jnp.float32)],
        ),
        compiler_params=pltpu.CompilerParams(
            dimension_semantics=("parallel", "arbitrary"),
            vmem_limit_bytes=vmem_limit),
        cost_estimate=cost,
    )(x2, w1p, b1p, w2p, b2p, g_p, beta_p)
    return out[:rows, :D].reshape(orig_shape)


# ---------------------------------------------------------------------------
# One-time parameter packing (hoisted out of the forward pass).
# ---------------------------------------------------------------------------
def pack_params(params, *, dtype=jnp.float32):
    D = params["tok_emb"].shape[1]
    H = params["layers"][0]["ffn"][0].shape[1]
    Dp = _round_up(D, 128)
    Hp = _round_up(H, 128)

    def pack_attn(p):
        wq, bq, wk, bk, wv, bv, wo, bo = p
        wkv = jnp.concatenate([wk, wv], axis=1).astype(dtype)          # [D, 2D]
        bkv = jnp.concatenate([bk, bv]).reshape(1, 2 * D).astype(dtype)
        return (wq.astype(dtype), bq.reshape(1, D).astype(dtype),
                wkv, bkv,
                wo.astype(dtype), bo.reshape(1, D).astype(dtype))

    def pad_row(v, width):
        return jnp.pad(v.reshape(1, -1), ((0, 0), (0, width - v.shape[-1])))

    packed_layers = []
    for lp in params["layers"]:
        w1, b1, w2, b2 = lp["ffn"]
        packed_layers.append(dict(
            self_attn=pack_attn(lp["self_attn"]),
            enc_attn=pack_attn(lp["enc_attn"]),
            ffn=(jnp.pad(w1, ((0, Dp - D), (0, Hp - H))).astype(dtype),
                 pad_row(b1, Hp).astype(dtype),
                 jnp.pad(w2, ((0, Hp - H), (0, Dp - D))).astype(dtype),
                 pad_row(b2, Dp).astype(dtype)),
            norm1_g=lp["norm1_g"].reshape(1, D).astype(dtype),
            norm1_b=lp["norm1_b"].reshape(1, D).astype(dtype),
            norm2_g=lp["norm2_g"].reshape(1, D).astype(dtype),
            norm2_b=lp["norm2_b"].reshape(1, D).astype(dtype),
            norm3_g=pad_row(lp["norm3_g"], Dp).astype(dtype),
            norm3_b=pad_row(lp["norm3_b"], Dp).astype(dtype),
        ))
    return dict(tok_emb=params["tok_emb"].astype(dtype),
                pos_emb=params["pos_emb"].astype(dtype),
                layers=packed_layers,
                dims=dict(D=D, H=H, Dp=Dp, Hp=Hp))


# ---------------------------------------------------------------------------
# Full decoder forward (embedding/positional lookup done in plain JAX).
# ---------------------------------------------------------------------------
def transformer_decoder_forward(packed, tokens, encoder_output, encoder_mask,
                                *, n_heads, embeddings_scale=True):
    """Returns (tensor, None) like the PyTorch module.
    TODO(synk): incr_state (incremental decoding cache) is not implemented."""
    D = packed["dims"]["D"]
    B, T = tokens.shape
    Lk = encoder_output.shape[1]
    dtype = packed["tok_emb"].dtype

    x = packed["tok_emb"][tokens]                       # embedding gather
    if embeddings_scale:
        x = x * math.sqrt(D)
    x = x + packed["pos_emb"][:T][None, :, :]

    enc_out = encoder_output.astype(dtype)
    enc_mask3 = encoder_mask.astype(jnp.float32).reshape(B, 1, Lk)  # key mask
    ones_mask = jnp.ones((B, 1, T), jnp.float32)        # self-attn: causal only

    for lp in packed["layers"]:
        x = mha_ln_block(x, x, ones_mask, *lp["self_attn"],
                         lp["norm1_g"], lp["norm1_b"],
                         n_heads=n_heads, causal=True)
        x = mha_ln_block(x, enc_out, enc_mask3, *lp["enc_attn"],
                         lp["norm2_g"], lp["norm2_b"],
                         n_heads=n_heads, causal=False)
        x = ffn_ln_block(x, *lp["ffn"], lp["norm3_g"], lp["norm3_b"], d_true=D)
    return x, None


# ---------------------------------------------------------------------------
# Pure-JAX reference (mirrors the PyTorch math exactly; canonical params).
# ---------------------------------------------------------------------------
_HI = jax.lax.Precision.HIGHEST


def ref_mha(x_q, x_kv, mask_valid, wq, bq, wk, bk, wv, bv, wo, bo, *, n_heads):
    B, Lq, D = x_q.shape
    Lk = x_kv.shape[1]
    dph = D // n_heads
    q = jnp.einsum("bld,dk->blk", x_q, wq, precision=_HI) + bq
    k = jnp.einsum("bld,dk->blk", x_kv, wk, precision=_HI) + bk
    v = jnp.einsum("bld,dk->blk", x_kv, wv, precision=_HI) + bv
    q = q.reshape(B, Lq, n_heads, dph).transpose(0, 2, 1, 3)
    k = k.reshape(B, Lk, n_heads, dph).transpose(0, 2, 1, 3)
    v = v.reshape(B, Lk, n_heads, dph).transpose(0, 2, 1, 3)
    logits = jnp.einsum("bhqd,bhkd->bhqk", q, k, precision=_HI)
    logits = jnp.where(mask_valid[:, None, :, :] > 0, logits, -1e20) / math.sqrt(dph)
    w = jax.nn.softmax(logits, axis=-1)
    att = jnp.einsum("bhqk,bhkd->bhqd", w, v, precision=_HI)
    att = att.transpose(0, 2, 1, 3).reshape(B, Lq, D)
    return jnp.einsum("bld,dk->blk", att, wo, precision=_HI) + bo


def ref_add_ln(x, res, g, b):
    y = x + res
    mean = jnp.mean(y, axis=-1, keepdims=True)
    var = jnp.mean((y - mean) ** 2, axis=-1, keepdims=True)
    return (y - mean) * jax.lax.rsqrt(var + 1e-5) * g + b


def ref_ffn(x, w1, b1, w2, b2):
    h = jnp.maximum(jnp.einsum("bld,dh->blh", x, w1, precision=_HI) + b1, 0.0)
    return jnp.einsum("blh,hd->bld", h, w2, precision=_HI) + b2


def ref_transformer_decoder_forward(params, tokens, encoder_output, encoder_mask,
                                    *, n_heads, embeddings_scale=True):
    D = params["tok_emb"].shape[1]
    B, T = tokens.shape
    Lk = encoder_output.shape[1]
    x = params["tok_emb"][tokens]
    if embeddings_scale:
        x = x * math.sqrt(D)
    x = x + params["pos_emb"][:T][None, :, :]
    causal = jnp.broadcast_to(
        jnp.tril(jnp.ones((T, T), jnp.float32))[None], (B, T, T))
    enc_mask = jnp.broadcast_to(
        encoder_mask.astype(jnp.float32)[:, None, :], (B, T, Lk))
    for lp in params["layers"]:
        res = x
        a = ref_mha(x, x, causal, *lp["self_attn"], n_heads=n_heads)
        x = ref_add_ln(a, res, lp["norm1_g"], lp["norm1_b"])
        res = x
        a = ref_mha(x, encoder_output, enc_mask, *lp["enc_attn"], n_heads=n_heads)
        x = ref_add_ln(a, res, lp["norm2_g"], lp["norm2_b"])
        res = x
        f = ref_ffn(x, *lp["ffn"])
        x = ref_add_ln(f, res, lp["norm3_g"], lp["norm3_b"])
    return x, None


# ---------------------------------------------------------------------------
# Parameter construction (matches the module's init choices; weights stored
# pre-transposed as [in, out]).
# ---------------------------------------------------------------------------
def sinusoidal_position_codes(n_pos, dim):
    pos_enc = np.array(
        [[pos / np.power(10000, 2 * (j // 2) / dim) for j in range(dim)]
         for pos in range(n_pos)], dtype=np.float64)
    out = np.zeros((n_pos, dim), dtype=np.float32)
    out[:, 0::2] = np.sin(pos_enc[:, 0::2])
    out[:, 1::2] = np.cos(pos_enc[:, 1::2])
    return jnp.asarray(out)


def init_params(key, *, vocab, n_positions, D, H_ffn, n_layers):
    keys = iter(jax.random.split(key, 2 + n_layers * 20))

    def xavier_normal(fan_in, fan_out):
        std = math.sqrt(2.0 / (fan_in + fan_out))
        return std * jax.random.normal(next(keys), (fan_in, fan_out), jnp.float32)

    def xavier_uniform(fan_in, fan_out):
        bound = math.sqrt(6.0 / (fan_in + fan_out))
        return jax.random.uniform(next(keys), (fan_in, fan_out), jnp.float32,
                                  -bound, bound)

    def linear_bias(fan_in, size):
        b = 1.0 / math.sqrt(fan_in)
        return jax.random.uniform(next(keys), (size,), jnp.float32, -b, b)

    def attn_params():
        return (xavier_normal(D, D), linear_bias(D, D),
                xavier_normal(D, D), linear_bias(D, D),
                xavier_normal(D, D), linear_bias(D, D),
                xavier_normal(D, D), linear_bias(D, D))

    tok_emb = jax.random.normal(next(keys), (vocab, D), jnp.float32)
    pos_emb = sinusoidal_position_codes(n_positions, D)
    layers = []
    for _ in range(n_layers):
        layers.append(dict(
            self_attn=attn_params(),
            enc_attn=attn_params(),
            ffn=(xavier_uniform(D, H_ffn), linear_bias(D, H_ffn),
                 xavier_uniform(H_ffn, D), linear_bias(H_ffn, D)),
            norm1_g=jnp.ones((D,), jnp.float32), norm1_b=jnp.zeros((D,), jnp.float32),
            norm2_g=jnp.ones((D,), jnp.float32), norm2_b=jnp.zeros((D,), jnp.float32),
            norm3_g=jnp.ones((D,), jnp.float32), norm3_b=jnp.zeros((D,), jnp.float32),
        ))
    return dict(tok_emb=tok_emb, pos_emb=pos_emb, layers=layers)


if __name__ == "__main__":
    # Small shapes consistent with the module.
    B, T, Lk = 2, 8, 8
    D, H_ffn, n_heads, n_layers = 32, 64, 4, 2
    vocab, n_positions = 50, 16

    key = jax.random.PRNGKey(0)
    k_par, k_tok, k_enc = jax.random.split(key, 3)

    params = init_params(k_par, vocab=vocab, n_positions=n_positions,
                         D=D, H_ffn=H_ffn, n_layers=n_layers)
    tokens = jax.random.randint(k_tok, (B, T), 0, vocab)
    encoder_output = jax.random.normal(k_enc, (B, Lk, D), jnp.float32)
    lengths = jnp.array([Lk, Lk - 3])
    encoder_mask = (jnp.arange(Lk)[None, :] < lengths[:, None]).astype(jnp.float32)

    # f32 run: checked tightly against the pure-JAX reference.
    packed = pack_params(params, dtype=jnp.float32)
    out, _ = transformer_decoder_forward(packed, tokens, encoder_output,
                                         encoder_mask, n_heads=n_heads)
    out = jax.block_until_ready(out)

    ref, _ = ref_transformer_decoder_forward(params, tokens, encoder_output,
                                             encoder_mask, n_heads=n_heads)
    assert out.shape == (B, T, D)
    max_diff = float(jnp.max(jnp.abs(out - ref)))
    assert jnp.allclose(out, ref, atol=5e-4, rtol=5e-4), \
        f"mismatch vs reference, max abs diff = {max_diff}"

    # bf16 run: exercises the low-precision MXU path (f32 accumulation, EUP
    # approximate reciprocal in softmax); sanity-checked for finiteness only.
    packed16 = pack_params(params, dtype=jnp.bfloat16)
    out16, _ = transformer_decoder_forward(packed16, tokens, encoder_output,
                                           encoder_mask, n_heads=n_heads)
    out16 = jax.block_until_ready(out16)
    assert out16.shape == (B, T, D)
    assert bool(jnp.all(jnp.isfinite(out16.astype(jnp.float32))))

    print("KERNEL_OK")
</pallas_src>

<mosaic_0001>
module attributes {stable_mosaic.version = 11 : i64} {
  func.func @mha_ln_kernel(%arg0: i32, %arg1: i32, %arg2: memref<1x8x32xf32, #tpu.memory_space<vmem>>, %arg3: memref<1x8x32xf32, #tpu.memory_space<vmem>>, %arg4: memref<1x1x8xf32, #tpu.memory_space<vmem>>, %arg5: memref<32x32xf32, #tpu.memory_space<vmem>>, %arg6: memref<1x32xf32, #tpu.memory_space<vmem>>, %arg7: memref<32x64xf32, #tpu.memory_space<vmem>>, %arg8: memref<1x64xf32, #tpu.memory_space<vmem>>, %arg9: memref<32x32xf32, #tpu.memory_space<vmem>>, %arg10: memref<1x32xf32, #tpu.memory_space<vmem>>, %arg11: memref<1x32xf32, #tpu.memory_space<vmem>>, %arg12: memref<1x32xf32, #tpu.memory_space<vmem>>, %arg13: memref<1x8x32xf32, #tpu.memory_space<vmem>>) attributes {dimension_semantics = [#tpu.dimension_semantics<parallel>, #tpu.dimension_semantics<parallel>], iteration_bounds = array<i64: 2, 1>, scalar_prefetch = 0 : i64, scratch_operands = 0 : i64, tpu.core_type = #tpu.core_type<tc>, window_params = [{transform_indices = @transform_0, window_bounds = array<i64: 1, 8, 32>}, {transform_indices = @transform_1, window_bounds = array<i64: 1, 8, 32>}, {transform_indices = @transform_2, window_bounds = array<i64: 1, 1, 8>}, {pipeline_mode = #tpu.pipeline_mode<synchronous>, transform_indices = @transform_3, window_bounds = array<i64: 32, 32>}, {pipeline_mode = #tpu.pipeline_mode<synchronous>, transform_indices = @transform_4, window_bounds = array<i64: 1, 32>}, {pipeline_mode = #tpu.pipeline_mode<synchronous>, transform_indices = @transform_5, window_bounds = array<i64: 32, 64>}, {pipeline_mode = #tpu.pipeline_mode<synchronous>, transform_indices = @transform_6, window_bounds = array<i64: 1, 64>}, {pipeline_mode = #tpu.pipeline_mode<synchronous>, transform_indices = @transform_7, window_bounds = array<i64: 32, 32>}, {pipeline_mode = #tpu.pipeline_mode<synchronous>, transform_indices = @transform_8, window_bounds = array<i64: 1, 32>}, {pipeline_mode = #tpu.pipeline_mode<synchronous>, transform_indices = @transform_9, window_bounds = array<i64: 1, 32>}, {pipeline_mode = #tpu.pipeline_mode<synchronous>, transform_indices = @transform_10, window_bounds = array<i64: 1, 32>}, {transform_indices = @transform_11, window_bounds = array<i64: 1, 8, 32>}]} {
    %c0 = arith.constant 0 : index
    %c0_0 = arith.constant 0 : index
    %c0_1 = arith.constant 0 : index
    %0 = vector.load %arg2[%c0, %c0_0, %c0_1] : memref<1x8x32xf32, #tpu.memory_space<vmem>>, vector<1x8x32xf32>
    %1 = vector.shape_cast %0 : vector<1x8x32xf32> to vector<8x32xf32>
    %c0_2 = arith.constant 0 : index
    %c0_3 = arith.constant 0 : index
    %c0_4 = arith.constant 0 : index
    %2 = vector.load %arg3[%c0_2, %c0_3, %c0_4] : memref<1x8x32xf32, #tpu.memory_space<vmem>>, vector<1x8x32xf32>
    %3 = vector.shape_cast %2 : vector<1x8x32xf32> to vector<8x32xf32>
    %c0_5 = arith.constant 0 : index
    %c0_6 = arith.constant 0 : index
    %4 = vector.load %arg5[%c0_5, %c0_6] : memref<32x32xf32, #tpu.memory_space<vmem>>, vector<32x32xf32>
    %cst = arith.constant dense<0.000000e+00> : vector<8x32xf32>
    %5 = tpu.matmul %1, %4, %cst {dimension_numbers = #tpu.dot_dimension_numbers<[1], [0], [0], [1], [0, 0, 1, 1], [], []>} : vector<8x32xf32>, vector<32x32xf32>, vector<8x32xf32> -> vector<8x32xf32>
    %c0_7 = arith.constant 0 : index
    %c0_8 = arith.constant 0 : index
    %6 = vector.load %arg6[%c0_7, %c0_8] : memref<1x32xf32, #tpu.memory_space<vmem>>, vector<1x32xf32>
    %7 = vector.broadcast %6 : vector<1x32xf32> to vector<8x32xf32>
    %8 = arith.addf %5, %7 : vector<8x32xf32>
    %c0_9 = arith.constant 0 : index
    %c0_10 = arith.constant 0 : index
    %9 = vector.load %arg7[%c0_9, %c0_10] : memref<32x64xf32, #tpu.memory_space<vmem>>, vector<32x64xf32>
    %cst_11 = arith.constant dense<0.000000e+00> : vector<8x64xf32>
    %10 = tpu.matmul %3, %9, %cst_11 {dimension_numbers = #tpu.dot_dimension_numbers<[1], [0], [0], [1], [0, 0, 1, 1], [], []>} : vector<8x32xf32>, vector<32x64xf32>, vector<8x64xf32> -> vector<8x64xf32>
    %c0_12 = arith.constant 0 : index
    %c0_13 = arith.constant 0 : index
    %11 = vector.load %arg8[%c0_12, %c0_13] : memref<1x64xf32, #tpu.memory_space<vmem>>, vector<1x64xf32>
    %12 = vector.broadcast %11 : vector<1x64xf32> to vector<8x64xf32>
    %13 = arith.addf %10, %12 : vector<8x64xf32>
    %14 = vector.extract_strided_slice %13 {offsets = [0, 0], sizes = [8, 32], strides = [1, 1]} : vector<8x64xf32> to vector<8x32xf32>
    %15 = vector.extract_strided_slice %13 {offsets = [0, 32], sizes = [8, 32], strides = [1, 1]} : vector<8x64xf32> to vector<8x32xf32>
    %16 = vector.shape_cast %8 : vector<8x32xf32> to vector<8x4x8xf32>
    %17 = tpu.transpose %16, [1, 0, 2] : vector<8x4x8xf32> -> vector<4x8x8xf32>
    %18 = vector.shape_cast %14 : vector<8x32xf32> to vector<8x4x8xf32>
    %19 = tpu.transpose %18, [1, 0, 2] : vector<8x4x8xf32> -> vector<4x8x8xf32>
    %20 = vector.shape_cast %15 : vector<8x32xf32> to vector<8x4x8xf32>
    %21 = tpu.transpose %20, [1, 0, 2] : vector<8x4x8xf32> -> vector<4x8x8xf32>
    "tpu.trace_start"() <{level = 10 : i32, message = "hqd,hkd->hqk"}> : () -> ()
    %cst_14 = arith.constant dense<0.000000e+00> : vector<4x8x8xf32>
    %22 = tpu.matmul %17, %19, %cst_14 {dimension_numbers = #tpu.dot_dimension_numbers<[2], [2], [1], [1], [0, 0, 0, 1, 1, 1], [0], [0]>} : vector<4x8x8xf32>, vector<4x8x8xf32>, vector<4x8x8xf32> -> vector<4x8x8xf32>
    "tpu.trace_stop"() : () -> ()
    %c0_15 = arith.constant 0 : index
    %c0_16 = arith.constant 0 : index
    %c0_17 = arith.constant 0 : index
    %23 = vector.load %arg4[%c0_15, %c0_16, %c0_17] : memref<1x1x8xf32, #tpu.memory_space<vmem>>, vector<1x1x8xf32>
    %24 = vector.shape_cast %23 : vector<1x1x8xf32> to vector<1x8xf32>
    %25 = vector.shape_cast %24 : vector<1x8xf32> to vector<1x8xf32>
    %26 = vector.broadcast %25 : vector<1x8xf32> to vector<8x8xf32>
    %cst_18 = arith.constant 0.000000e+00 : f32
    %27 = vector.broadcast %cst_18 : f32 to vector<8x8xf32>
    %28 = arith.cmpf ogt, %26, %27 : vector<8x8xf32>
    %29 = tpu.iota {dimensions = array<i32: 0>} : vector<8x8xi32>
    %c8_i32 = arith.constant 8 : i32
    %30 = arith.muli %arg1, %c8_i32 : i32
    %31 = vector.broadcast %30 : i32 to vector<8x8xi32>
    %32 = arith.addi %29, %31 : vector<8x8xi32>
    %33 = tpu.iota {dimensions = array<i32: 1>} : vector<8x8xi32>
    %34 = arith.cmpi sle, %33, %32 : vector<8x8xi32>
    %35 = arith.andi %28, %34 : vector<8x8xi1>
    %36 = vector.shape_cast %35 : vector<8x8xi1> to vector<1x8x8xi1>
    %cst_19 = arith.constant -1.000000e+20 : f32
    %37 = vector.shape_cast %36 : vector<1x8x8xi1> to vector<1x8x8xi1>
    %38 = vector.broadcast %37 : vector<1x8x8xi1> to vector<4x8x8xi1>
    %39 = vector.broadcast %cst_19 : f32 to vector<4x8x8xf32>
    %40 = arith.select %38, %22, %39 : vector<4x8x8xi1>, vector<4x8x8xf32>
    %cst_20 = arith.constant 0.353553385 : f32
    %41 = vector.broadcast %cst_20 : f32 to vector<4x8x8xf32>
    %42 = arith.mulf %40, %41 : vector<4x8x8xf32>
    %cst_21 = arith.constant dense<0xFF800000> : vector<4x8xf32>
    %43 = vector.multi_reduction <maximumf>, %42, %cst_21 [2] : vector<4x8x8xf32> to vector<4x8xf32>
    %44 = vector.shape_cast %43 : vector<4x8xf32> to vector<4x8x1xf32>
    %45 = vector.broadcast %44 : vector<4x8x1xf32> to vector<4x8x8xf32>
    %46 = arith.subf %42, %45 : vector<4x8x8xf32>
    %47 = math.exp %46 : vector<4x8x8xf32>
    %cst_22 = arith.constant dense<0.000000e+00> : vector<4x8xf32>
    %48 = vector.multi_reduction <add>, %47, %cst_22 [2] : vector<4x8x8xf32> to vector<4x8xf32>
    %49 = vector.shape_cast %48 : vector<4x8xf32> to vector<4x8x1xf32>
    "tpu.trace_start"() <{level = 10 : i32, message = "hqk,hkd->hqd"}> : () -> ()
    %cst_23 = arith.constant dense<0.000000e+00> : vector<4x8x8xf32>
    %50 = tpu.matmul %47, %21, %cst_23 {dimension_numbers = #tpu.dot_dimension_numbers<[2], [1], [1], [2], [0, 0, 0, 1, 1, 2], [0], [0]>} : vector<4x8x8xf32>, vector<4x8x8xf32>, vector<4x8x8xf32> -> vector<4x8x8xf32>
    "tpu.trace_stop"() : () -> ()
    %51 = tpu.reciprocal %49 : vector<4x8x1xf32> -> vector<4x8x1xf32>
    %52 = vector.broadcast %51 : vector<4x8x1xf32> to vector<4x8x8xf32>
    %53 = arith.mulf %50, %52 : vector<4x8x8xf32>
    %54 = tpu.transpose %53, [1, 0, 2] : vector<4x8x8xf32> -> vector<8x4x8xf32>
    %55 = vector.shape_cast %54 : vector<8x4x8xf32> to vector<8x32xf32>
    %c0_24 = arith.constant 0 : index
    %c0_25 = arith.constant 0 : index
    %56 = vector.load %arg9[%c0_24, %c0_25] : memref<32x32xf32, #tpu.memory_space<vmem>>, vector<32x32xf32>
    %cst_26 = arith.constant dense<0.000000e+00> : vector<8x32xf32>
    %57 = tpu.matmul %55, %56, %cst_26 {dimension_numbers = #tpu.dot_dimension_numbers<[1], [0], [0], [1], [0, 0, 1, 1], [], []>} : vector<8x32xf32>, vector<32x32xf32>, vector<8x32xf32> -> vector<8x32xf32>
    %c0_27 = arith.constant 0 : index
    %c0_28 = arith.constant 0 : index
    %58 = vector.load %arg10[%c0_27, %c0_28] : memref<1x32xf32, #tpu.memory_space<vmem>>, vector<1x32xf32>
    %59 = vector.broadcast %58 : vector<1x32xf32> to vector<8x32xf32>
    %60 = arith.addf %57, %59 : vector<8x32xf32>
    %61 = arith.addf %60, %1 : vector<8x32xf32>
    %cst_29 = arith.constant dense<0.000000e+00> : vector<8xf32>
    %62 = vector.multi_reduction <add>, %61, %cst_29 [1] : vector<8x32xf32> to vector<8xf32>
    %63 = vector.shape_cast %62 : vector<8xf32> to vector<8x1xf32>
    %cst_30 = arith.constant 3.200000e+01 : f32
    %64 = vector.broadcast %cst_30 : f32 to vector<8x1xf32>
    %65 = arith.divf %63, %64 : vector<8x1xf32>
    %66 = vector.broadcast %65 : vector<8x1xf32> to vector<8x32xf32>
    %67 = arith.subf %61, %66 : vector<8x32xf32>
    %68 = arith.mulf %67, %67 : vector<8x32xf32>
    %cst_31 = arith.constant dense<0.000000e+00> : vector<8xf32>
    %69 = vector.multi_reduction <add>, %68, %cst_31 [1] : vector<8x32xf32> to vector<8xf32>
    %70 = vector.shape_cast %69 : vector<8xf32> to vector<8x1xf32>
    %cst_32 = arith.constant 3.200000e+01 : f32
    %71 = vector.broadcast %cst_32 : f32 to vector<8x1xf32>
    %72 = arith.divf %70, %71 : vector<8x1xf32>
    %cst_33 = arith.constant 9.99999974E-6 : f32
    %73 = vector.broadcast %cst_33 : f32 to vector<8x1xf32>
    %74 = arith.addf %72, %73 : vector<8x1xf32>
    %75 = math.rsqrt %74 : vector<8x1xf32>
    %76 = vector.broadcast %75 : vector<8x1xf32> to vector<8x32xf32>
    %77 = arith.mulf %67, %76 : vector<8x32xf32>
    %c0_34 = arith.constant 0 : index
    %c0_35 = arith.constant 0 : index
    %78 = vector.load %arg11[%c0_34, %c0_35] : memref<1x32xf32, #tpu.memory_space<vmem>>, vector<1x32xf32>
    %79 = vector.broadcast %78 : vector<1x32xf32> to vector<8x32xf32>
    %80 = arith.mulf %77, %79 : vector<8x32xf32>
    %c0_36 = arith.constant 0 : index
    %c0_37 = arith.constant 0 : index
    %81 = vector.load %arg12[%c0_36, %c0_37] : memref<1x32xf32, #tpu.memory_space<vmem>>, vector<1x32xf32>
    %82 = vector.broadcast %81 : vector<1x32xf32> to vector<8x32xf32>
    %83 = arith.addf %80, %82 : vector<8x32xf32>
    %c0_38 = arith.constant 0 : index
    %c0_39 = arith.constant 0 : index
    %c0_40 = arith.constant 0 : index
    %84 = vector.load %arg13[%c0_38, %c0_39, %c0_40] : memref<1x8x32xf32, #tpu.memory_space<vmem>>, vector<1x8x32xf32>
    %85 = vector.shape_cast %84 : vector<1x8x32xf32> to vector<8x32xf32>
    %86 = vector.shape_cast %83 : vector<8x32xf32> to vector<1x8x32xf32>
    tpu.vector_store %arg13[%c0_38, %c0_39, %c0_40], %86 {strides = array<i32>} : memref<1x8x32xf32, #tpu.memory_space<vmem>>, vector<1x8x32xf32>,
    return
  }
  func.func @transform_0(%arg0: i32, %arg1: i32) -> (i32, i32, i32) {
    %c0_i32 = arith.constant 0 : i32
    %c0_i32_0 = arith.constant 0 : i32
    return %arg0, %arg1, %c0_i32 : i32, i32, i32
  }
  func.func @transform_1(%arg0: i32, %arg1: i32) -> (i32, i32, i32) {
    %c0_i32 = arith.constant 0 : i32
    %c0_i32_0 = arith.constant 0 : i32
    %c0_i32_1 = arith.constant 0 : i32
    return %arg0, %c0_i32, %c0_i32_0 : i32, i32, i32
  }
  func.func @transform_2(%arg0: i32, %arg1: i32) -> (i32, i32, i32) {
    %c0_i32 = arith.constant 0 : i32
    %c0_i32_0 = arith.constant 0 : i32
    %c0_i32_1 = arith.constant 0 : i32
    return %arg0, %c0_i32, %c0_i32_0 : i32, i32, i32
  }
  func.func @transform_3(%arg0: i32, %arg1: i32) -> (i32, i32) {
    %c0_i32 = arith.constant 0 : i32
    %c0_i32_0 = arith.constant 0 : i32
    %c0_i32_1 = arith.constant 0 : i32
    return %c0_i32, %c0_i32_0 : i32, i32
  }
  func.func @transform_4(%arg0: i32, %arg1: i32) -> (i32, i32) {
    %c0_i32 = arith.constant 0 : i32
    %c0_i32_0 = arith.constant 0 : i32
    %c0_i32_1 = arith.constant 0 : i32
    return %c0_i32, %c0_i32_0 : i32, i32
  }
  func.func @transform_5(%arg0: i32, %arg1: i32) -> (i32, i32) {
    %c0_i32 = arith.constant 0 : i32
    %c0_i32_0 = arith.constant 0 : i32
    %c0_i32_1 = arith.constant 0 : i32
    return %c0_i32, %c0_i32_0 : i32, i32
  }
  func.func @transform_6(%arg0: i32, %arg1: i32) -> (i32, i32) {
    %c0_i32 = arith.constant 0 : i32
    %c0_i32_0 = arith.constant 0 : i32
    %c0_i32_1 = arith.constant 0 : i32
    return %c0_i32, %c0_i32_0 : i32, i32
  }
  func.func @transform_7(%arg0: i32, %arg1: i32) -> (i32, i32) {
    %c0_i32 = arith.constant 0 : i32
    %c0_i32_0 = arith.constant 0 : i32
    %c0_i32_1 = arith.constant 0 : i32
    return %c0_i32, %c0_i32_0 : i32, i32
  }
  func.func @transform_8(%arg0: i32, %arg1: i32) -> (i32, i32) {
    %c0_i32 = arith.constant 0 : i32
    %c0_i32_0 = arith.constant 0 : i32
    %c0_i32_1 = arith.constant 0 : i32
    return %c0_i32, %c0_i32_0 : i32, i32
  }
  func.func @transform_9(%arg0: i32, %arg1: i32) -> (i32, i32) {
    %c0_i32 = arith.constant 0 : i32
    %c0_i32_0 = arith.constant 0 : i32
    %c0_i32_1 = arith.constant 0 : i32
    return %c0_i32, %c0_i32_0 : i32, i32
  }
  func.func @transform_10(%arg0: i32, %arg1: i32) -> (i32, i32) {
    %c0_i32 = arith.constant 0 : i32
    %c0_i32_0 = arith.constant 0 : i32
    %c0_i32_1 = arith.constant 0 : i32
    return %c0_i32, %c0_i32_0 : i32, i32
  }
  func.func @transform_11(%arg0: i32, %arg1: i32) -> (i32, i32, i32) {
    %c0_i32 = arith.constant 0 : i32
    %c0_i32_0 = arith.constant 0 : i32
    return %arg0, %arg1, %c0_i32 : i32, i32, i32
  }
}

</mosaic_0001>

<bundles_post_ra>
// kernel: tpu_custom_call.1
= control target key start
LH: loop header
LB: loop body
LE: loop exit
PB: predicated region body
PF: predicated region fallthrough
CT: control target
= control target key end

     0   :  { %s3357_s0 = inlined_call_operand.hbm [shape: f32[2,8,32], index: 0, kind: input, shape index: {}]   ;;  %s3358_s1 = inlined_call_operand.hbm [shape: f32[2,8,32], index: 1, kind: input, shape index: {}]   ;;  %s3359_s2 = inlined_call_operand.vmem [shape: f32[2,1,8], index: 2, kind: input, shape index: {}]   ;;  %s3360_s3 = inlined_call_operand.hbm [shape: f32[32,32], index: 3, kind: input, shape index: {}]   ;;  %s3361_s4 = inlined_call_operand.vmem [shape: f32[1,32], index: 4, kind: input, shape index: {}]   ;;  %s3362_s5 = inlined_call_operand.hbm [shape: f32[32,64], index: 5, kind: input, shape index: {}]   ;;  %s3363_s6 = inlined_call_operand.vmem [shape: f32[1,64], index: 6, kind: input, shape index: {}]   ;;  %s3364_s7 = inlined_call_operand.hbm [shape: f32[32,32], index: 7, kind: input, shape index: {}]   ;;  %s3365_s8 = inlined_call_operand.vmem [shape: f32[1,32], index: 8, kind: input, shape index: {}]   ;;  %s3366_s9 = inlined_call_operand.vmem [shape: f32[1,32], index: 9, kind: input, shape index: {}]   ;;  %s3367_s10 = inlined_call_operand.vmem [shape: f32[1,32], index: 10, kind: input, shape index: {}]   ;;  %s3368_s11 = inlined_call_operand.hbm [shape: f32[2,8,32], index: 11, kind: output, shape index: {}]  }
   0x1   :  { %3376 = sst [smem:[#allocation19_spill]] %s3359_s2 }
   0x2   :  { %3377 = sst [smem:[#allocation20_spill]] %s3360_s3 }
   0x3   :  { %3378 = sst [smem:[#allocation21_spill]] %s3362_s5 }
   0x4   :  { %3379 = sst [smem:[#allocation22_spill]] %s3364_s7 }
   0x5   :  { %3380 = sst [smem:[#allocation23_spill]] %s3365_s8 }
   0x6   :  { %3381 = sst [smem:[#allocation24_spill]] %s3366_s9 }
   0x7   :  { %3382 = sst [smem:[#allocation25_spill]] %s3367_s10 }
   0x8   :  { %3383 = sst [smem:[#allocation26_spill]] %s3368_s11 }
   0x9   :  { %16 = vsyncpa [#allocation3], 0 }
   0xa   :  { %18 = vsyncpa [#allocation3 + $0x1], 0 }
   0xb   :  { %19 = vsyncpa [#allocation6], 0 }
   0xc   :  { %21 = vsyncpa [#allocation6 + $0x1], 0 }
   0xd   :  { %22 = vsyncpa [#allocation9], 0 }
   0xe   :  { %23 = vsyncpa [#allocation4], 0 }
   0xf   :  { %25 = vsyncpa [#allocation4 + $0x1], 0  ;;  %s2839_s17 = smov 0   ;;  %s2841_s18 = smov 0  }
  0x10   :  { %s2843_s19 = smov 0   ;;  %s2845_s20 = smov 0  }
  0x11   :  { %s2847_s21 = smov 0   ;;  %s2849_s22 = smov 0  }
  0x12 LB: > { %3384 = sst [smem:[#allocation17_spill]] %s2737_s17  ;;  %s2870_s23 = sadd.s32 4294967295, %s2757_s22   ;;  %s2757_s22 = sphi %s2849_s22, %s31_s22   ;;  %s2753_s21 = sphi %s2847_s21, %s3419_s21   ;;  %s2749_s20 = sphi %s2845_s20, %s3418_s20   ;;  %s2745_s19 = sphi %s2843_s19, %s3417_s19   ;;  %s2741_s18 = sphi %s2841_s18, %s3416_s18   ;;  %s2737_s17 = sphi %s2839_s17, %s3415_s17  }
  0x13   : > { %s2217_s24 = sadd.s32 4294967294, %s2757_s22   ;;  %p65_p0 = scmp.ne.s32.totalorder %s2741_s18, %s2737_s17 }
  0x14   : > { %p3372_p1 = scmp.eq.s32.totalorder %s2870_s23, 0  ;;  %p317_p3 = scmp.eq.s32.totalorder %s2217_s24, 1 }
  0x15   : > { %p2218_p5 = scmp.ge.s32.totalorder %s2757_s22, 1  ;;  %p324_p7 = scmp.lt.s32.totalorder %s2757_s22, 3 }
  0x16   : > { %p2879_p4 = por %p3372_p1, %p65_p0  ;;  %p2884_p6 = por %p317_p3, %p65_p0 }
  0x17   : > { %p2889_p8 = pnand %p2218_p5, %p324_p7  ;;  %s2759_s28 = smov [#allocation7]  }
  0x18   : > { %s3385_s25 = scalar_select %p2879_p4, 1, 0 }
  0x19   : > { %s3386_s26 = scalar_select %p2884_p6, 1, 0 }
  0x1a   : > { %s3388_s27 = scalar_select %p2889_p8, 1, 0 }
  0x1b   : > { %3387 = sst [smem:[#allocation18_spill]] %s3386_s26  ;;  %s336_s29 = sshll.u32 %s2759_s28, 4  ;;  %s2893_s29 = int_to_ptr.vmem [resolvable:$true] %s336_s29 }
  0x1c   : > { %p2407_p9 = pneg %p2889_p8  ;;  %s2760_s12 = smov [#allocation8]  }
  0x1d   : > { %s352_s13 = sshll.u32 %s2760_s12, 4  ;;  %s2761_s14 = smov [#allocation10]   ;;  %s2904_s13 = int_to_ptr.vmem [resolvable:$true] %s352_s13 }
  0x1e   : > { %p2900_p11 = pnand %p2407_p9, %p3372_p1  ;;  %s2906_s15 = sshll.u32 %s2761_s14, 4  ;;  %s369_s15 = int_to_ptr.vmem [resolvable:$true] %s2906_s15 }
  0x1f   : > { %s3390_s3 = sld [smem:[#allocation20_spill]] }
  0x20   : > { %p2916_p13 = pneg %p2900_p11 }
  0x25   : > { %s2519_s28 = scalar_lea.hbm %s3390_s3, 512 }
  0x26   : > { %p2520_p12 = scmp.ne.s32.totalorder %s3390_s3, %s2519_s28  ;;  %p2526_p5 = scmp.lt.u32.totalorder %s2519_s28, %s3390_s3 }
  0x28   : > { %p2522_p0 = pnand %p2916_p13, %p2520_p12 }
  0x2a   : > { %p2523_p3 = pneg %p2522_p0 }
  0x2c   : > { %p2528_p7 = pnand %p2526_p5, %p2523_p3 }
  0x2e   : > { %2531 = shalt.err (!%p2528_p7)
}
  0x2f   : > { %s2532_s17 = scalar_lea.vmem %s2893_s29, 512  ;;  %p2540_p2 = scmp.lt.s32.totalorder %s2893_s29, %s2893_s29 }
  0x30   : > { %p2533_p9 = scmp.ne.s32.totalorder %s2893_s29, %s2532_s17  ;;  %p2541_p6 = scmp.lt.s32.totalorder %s2532_s17, %s2532_s17 }
  0x32   : > { %p2535_p10 = pnand %p2533_p9, %p2916_p13  ;;  %p2542_p12 = por %p2541_p6, %p2540_p2 }
  0x34   : > { %p2536_p1 = pneg %p2535_p10 }
  0x36   : > { %p2543_p0 = pnand %p2542_p12, %p2536_p1 }
  0x38   : > { %2546 = shalt.err (!%p2543_p0)
}
  0x39   : > { %s2762_s26 = smov 128   ;;  %s2763_s16 = smov 8  }
  0x3a   : > { %2410 = dma.hbm_to_vmem [thread:$0]  (!%p2900_p11), %s3390_s3, 512, %s2893_s29, [#allocation6], %s2762_s26, %s2762_s26, %s2763_s16  }
  0x3b   : > { %s3392_s5 = sld [smem:[#allocation21_spill]] }
  0x41   : > { %s2547_s17 = scalar_lea.hbm %s3392_s5, 512 }
  0x42   : > { %p2548_p1 = scmp.ne.s32.totalorder %s3392_s5, %s2547_s17  ;;  %p2554_p10 = scmp.lt.u32.totalorder %s2547_s17, %s3392_s5 }
  0x44   : > { %p2550_p2 = pnand %p2548_p1, %p2916_p13 }
  0x46   : > { %p2551_p6 = pneg %p2550_p2 }
  0x48   : > { %p2556_p3 = pnand %p2554_p10, %p2551_p6 }
  0x4a   : > { %2559 = shalt.err (!%p2556_p3)
}
  0x4b   : > { %s2560_s29 = scalar_lea.vmem %s2904_s13, 512  ;;  %p2568_p12 = scmp.lt.s32.totalorder %s2904_s13, %s2904_s13 }
  0x4c   : > { %p2561_p5 = scmp.ne.s32.totalorder %s2904_s13, %s2560_s29  ;;  %p2569_p0 = scmp.lt.s32.totalorder %s2560_s29, %s2560_s29 }
  0x4e   : > { %p2563_p7 = pnand %p2561_p5, %p2916_p13  ;;  %p2570_p1 = por %p2569_p0, %p2568_p12 }
  0x50   : > { %p2564_p9 = pneg %p2563_p7 }
  0x52   : > { %p2571_p2 = pnand %p2570_p1, %p2564_p9 }
  0x54   : > { %2574 = shalt.err (!%p2571_p2)
}
  0x55   : > { %2413 = dma.hbm_to_vmem [thread:$0]  (!%p2900_p11), %s3392_s5, 512, %s2904_s13, [#allocation9], %s2762_s26, %s2762_s26, %s2763_s16  }
  0x56   : > { %s3393_s7 = sld [smem:[#allocation22_spill]] }
  0x5c   : > { %s2575_s24 = scalar_lea.hbm %s3393_s7, 512 }
  0x5d   : > { %p2576_p6 = scmp.ne.s32.totalorder %s3393_s7, %s2575_s24  ;;  %p2582_p5 = scmp.lt.u32.totalorder %s2575_s24, %s3393_s7 }
  0x5f   : > { %p2578_p10 = pnand %p2576_p6, %p2916_p13 }
  0x61   : > { %p2579_p3 = pneg %p2578_p10 }
  0x63   : > { %p2584_p7 = pnand %p2582_p5, %p2579_p3 }
  0x65   : > { %2587 = shalt.err (!%p2584_p7)
}
  0x66   : > { %s2588_s29 = scalar_lea.vmem %s369_s15, 512  ;;  %p2596_p1 = scmp.lt.s32.totalorder %s369_s15, %s369_s15 }
  0x67   : > { %p2589_p9 = scmp.ne.s32.totalorder %s369_s15, %s2588_s29  ;;  %p2597_p2 = scmp.lt.s32.totalorder %s2588_s29, %s2588_s29 }
  0x69   : > { %p2591_p12 = pnand %p2589_p9, %p2916_p13  ;;  %p2598_p4 = por %p2597_p2, %p2596_p1 }
  0x6b   : > { %p2592_p0 = pneg %p2591_p12 }
  0x6d   : > { %p2599_p8 = pnand %p2598_p4, %p2592_p0 }
  0x6f   : > { %2602 = shalt.err (!%p2599_p8)
}
  0x70   : > { %2416 = dma.hbm_to_vmem [thread:$0]  (!%p2900_p11), %s3393_s7, 512, %s369_s15, [#allocation9], %s2762_s26, %s2762_s26, %s2763_s16  }
  0x71   : > { %s52_s11 = sadd.s32 1, %s2745_s19  ;;  %s43_s30 = sadd.s32 1, %s2753_s21 }
  0x72   : > { %p59_p4 = scmp.ne.s32.totalorder %s2745_s19, %s2741_s18  ;;  %p45_p8 = scmp.ge.s32.totalorder %s43_s30, 2 }
  0x73   : > { %p60_p13 = scmp.eq.s32.totalorder %s2757_s22, 0  ;;  %p3394_p6 = scmp.eq.s32.totalorder %s2870_s23, 1 }
  0x74   : > { %p2431_p3 = scmp.lt.s32.totalorder %s2757_s22, 2  ;;  %s3421_s30 = smov (%p45_p8, %s43_s30), 0 }
  0x75   : > { %p2995_p10 = por %p3394_p6, %p59_p4  ;;  %p61_p5 = por %p60_p13, %p59_p4 }
  0x76   : > { %s391_s9 = sand.u32 1, %s2745_s19   ;;  %s47_s10 = ssub.s32 %s2753_s21, %s3421_s30 }
  0x77   : > { %s3395_s8 = scalar_select %p2995_p10, 1, 0 }
  0x78   : > { %p50_p11 = scmp.eq.s32.totalorder %s47_s10, 0  ;;  %s3005_s15 = sshll.u32 %s391_s9, 3 }
  0x79   : > { %s2224_s26 = sshll.u32 %s2753_s21, 7  ;;  %s395_s14 = scalar_lea.vmem [#allocation2], %s3005_s15 }
  0x7a   : > { %s3009_s16 = scalar_select %p50_p11, %s2745_s19, %s52_s11  }
  0x7b   : > { %s3014_s12 = scalar_lea.hbm %s3357_s0, %s2224_s26  ;;  %s403_s17 = sshll.u32 %s395_s14, 4  ;;  %s3017_s17 = int_to_ptr.vmem [resolvable:$true] %s403_s17 }
  0x7c   : > { %p3021_p7 = pnand %p2431_p3, %p61_p5  ;;  %s3028_s11 = scalar_lea.hbm %s3358_s1, %s2224_s26 }
  0x7d   : > { %s410_s10 = sand.u32 1, %s2757_s22   ;;  %s392_s24 = scalar_lea.sflag [#allocation3], %s391_s9 }
  0x7e   : > { %s2603_s28 = scalar_lea.hbm %s3014_s12, 128  ;;  %p2605_p12 = pneg %p3021_p7 }
  0x7f   : > { %p2604_p9 = scmp.ne.s32.totalorder %s3014_s12, %s2603_s28  ;;  %s2608_s5 = scalar_lea.hbm %s3357_s0, 256 }
  0x80   : > { %p2609_p2 = scmp.lt.u32.totalorder %s3014_s12, %s3357_s0  ;;  %p2610_p4 = scmp.lt.u32.totalorder %s2608_s5, %s2603_s28 }
  0x81   : > { %p2606_p0 = pnand %p2605_p12, %p2604_p9  ;;  %p2612_p13 = scmp.lt.u32.totalorder %s2603_s28, %s3014_s12 }
  0x82   : > { %p2611_p8 = por %p2610_p4, %p2609_p2 }
  0x83   : > { %p2607_p1 = pneg %p2606_p0 }
  0x84   : > { %p2613_p6 = por %p2612_p13, %p2611_p8 }
  0x86   : > { %p2614_p3 = pnand %p2613_p6, %p2607_p1 }
  0x88   : > { %2617 = shalt.err (!%p2614_p3)
}
  0x89   : > { %s2618_s9 = scalar_lea.vmem %s3017_s17, 128  ;;  %s2764_s3 = smov [#allocation2]  }
  0x8a   : > { %p2619_p5 = scmp.ne.s32.totalorder %s3017_s17, %s2618_s9  ;;  %s2623_s26 = sshll.u32 %s2764_s3, 4  ;;  %s2624_s26 = int_to_ptr.vmem [resolvable:$false] %s2623_s26 }
  0x8b   : > { %s2625_s7 = scalar_lea.vmem %s2624_s26, 256  ;;  %p2626_p0 = scmp.lt.s32.totalorder %s3017_s17, %s2624_s26 }
  0x8c   : > { %p2621_p11 = pnand %p2619_p5, %p2605_p12  ;;  %p2627_p2 = scmp.lt.s32.totalorder %s2625_s7, %s2618_s9 }
  0x8e   : > { %p2622_p9 = pneg %p2621_p11  ;;  %p2628_p4 = por %p2627_p2, %p2626_p0 }
  0x90   : > { %p2629_p8 = pnand %p2628_p4, %p2622_p9 }
  0x92   : > { %2632 = shalt.err (!%p2629_p8)
}
  0x93   : > { %2420 = dma.hbm_to_vmem [thread:$0]  (!%p3021_p7), %s3014_s12, 128, %s3017_s17, %s392_s24  }
  0x94   : > { %s414_s5 = scalar_lea.vmem [#allocation5], %s3005_s15  ;;  %s411_s28 = scalar_lea.sflag [#allocation6], %s410_s10 }
  0x95   : > { %s421_s2 = sshll.u32 %s414_s5, 4  ;;  %s2633_s14 = scalar_lea.hbm %s3028_s11, 128  ;;  %s422_s2 = int_to_ptr.vmem [resolvable:$true] %s421_s2 }
  0x96   : > { %p2634_p1 = scmp.ne.s32.totalorder %s3028_s11, %s2633_s14  ;;  %s2638_s3 = scalar_lea.hbm %s3358_s1, 256 }
  0x97   : > { %p2639_p3 = scmp.lt.u32.totalorder %s3028_s11, %s3358_s1  ;;  %p2640_p5 = scmp.lt.u32.totalorder %s2638_s3, %s2633_s14 }
  0x98   : > { %p2636_p13 = pnand %p2634_p1, %p2605_p12  ;;  %p2642_p9 = scmp.lt.u32.totalorder %s2633_s14, %s3028_s11 }
  0x99   : > { %p2641_p11 = por %p2640_p5, %p2639_p3 }
  0x9a   : > { %p2637_p6 = pneg %p2636_p13 }
  0x9b   : > { %p2643_p0 = por %p2642_p9, %p2641_p11 }
  0x9d   : > { %p2644_p2 = pnand %p2643_p0, %p2637_p6 }
  0x9f   : > { %2647 = shalt.err (!%p2644_p2)
}
  0xa0   : > { %s2648_s15 = scalar_lea.vmem %s422_s2, 128  ;;  %s2765_s12 = smov [#allocation5]  }
  0xa1   : > { %p2649_p4 = scmp.ne.s32.totalorder %s422_s2, %s2648_s15  ;;  %s2653_s17 = sshll.u32 %s2765_s12, 4  ;;  %s2654_s17 = int_to_ptr.vmem [resolvable:$false] %s2653_s17 }
  0xa2   : > { %s2655_s10 = scalar_lea.vmem %s2654_s17, 256  ;;  %p2656_p13 = scmp.lt.s32.totalorder %s422_s2, %s2654_s17 }
  0xa3   : > { %p2651_p8 = pnand %p2649_p4, %p2605_p12  ;;  %p2657_p10 = scmp.lt.s32.totalorder %s2655_s10, %s2648_s15 }
  0xa5   : > { %p2652_p1 = pneg %p2651_p8  ;;  %p2658_p3 = por %p2657_p10, %p2656_p13 }
  0xa7   : > { %p2659_p5 = pnand %p2658_p3, %p2652_p1 }
  0xa9   : > { %2662 = shalt.err (!%p2659_p5)
}
  0xaa   : > { %2423 = dma.hbm_to_vmem [thread:$0]  (!%p3021_p7), %s3028_s11, 128, %s422_s2, %s411_s28  }
  0xab   : > { %p3397_p6 = scmp.ne.s32.totalorder %s3388_s27, 0 }
  0xac   : > { %s3081_s24 = sand.u32 (!%p3397_p6), 1, %s2741_s18   ;;  %p3398_p10 = scmp.ne.s32.totalorder (!%p3397_p6), %s3385_s25, 0 }
  0xad   : > { %436 = sbr.rel (%p3397_p6) target bundleno = 1844 (0x734), region = 64  ;;  %s3084_s5 = sshll.u32 (!%p3397_p6), %s3081_s24, 3 }
  0xae   : > { %s439_s14 = scalar_lea.sflag (!%p3397_p6), [#allocation3], %s3081_s24  ;;  %s442_s13 = scalar_lea.vmem (!%p3397_p6), [#allocation2], %s3084_s5 }
  0xb4   : > { %2716 = dma.done.wait (%p3398_p10), %s439_s14, 128  }
  0xb5   : > { %2718 = vsyncadd (%p3398_p10), %s439_s14, 4294967168  ;;  %s447_s27 = sand.u32 1, %s2870_s23   ;;  %s451_s11 = scalar_lea.vmem [#allocation5], %s3084_s5 }
  0xb6   : > { %s448_s29 = scalar_lea.sflag [#allocation6], %s447_s27 }
  0xb7   : > { %2720 = dma.done.wait (%p3398_p10), %s448_s29, 128  }
  0xb8   : > { %2722 = vsyncadd (%p3398_p10), %s448_s29, 4294967168  ;;  %p3399_p7 = scmp.eq.s32.totalorder %s2870_s23, 0 }
  0xba   : > { %2724 = dma.done.wait (%p3399_p7), [#allocation6], 512   ;;  %p3400_p12 = pmov %p3399_p7 }
  0xbb   : > { %p3401_p11 = pmov %p3399_p7 }
  0xbc   : > { %2726 = vsyncadd (%p3400_p12), [#allocation6], 4294966784 }
  0xbd   : > { %2728 = dma.done.wait (%p3401_p11), [#allocation9], 1024   ;;  %p3402_p9 = pmov %p3399_p7 }
  0xbe   : > { %v2766_v0 = vmov 0.0|0.0   ;;  %vm2767_vm0 = vmmov 0   ;;  %v2768_v1 = vmov 0.0   ;;  %v600_v2 = vld [vmem:[#allocation8] sm:$0xff]  ;;  %v601_v3 = vld [vmem:[#allocation8 + $0x8] sm:$0xff]  ;;  %v602_v7 = vld [vmem:[#allocation8 + $0x10] sm:$0xff]  ;;  %v699_v26 = vlaneseq }
  0xbf   : > { %2730 = vsyncadd (%p3402_p9), [#allocation9], 4294966272  ;;  %2377 = vmatprep.subr.bf16.mxu1 %v2766_v0  ;;  %2371 = vmatprep.subr.bf16.mxu0 %v2766_v0  ;;  %v515_v4 = vld [vmem:[#allocation7] sm:$0xff]  ;;  %v2378_v5 = vpack.c.bf16 %v601_v3, %v600_v2  ;;  %v516_v6 = vld [vmem:[#allocation7 + $0x8] sm:$0xff]  ;;  %vm526_vm1 = vcmask 261120   ;;  %s2769_s9 = smov 104  }
  0xc0   : > { %2317 = vmatprep.mubr.msk.f32.mxu1 %vm2767_vm0, %v2768_v1  ;;  %2306 = vmatprep.mubr.msk.f32.mxu0 %vm2767_vm0, %v2768_v1  ;;  %v603_v8 = vld [vmem:[#allocation8 + $0x18] sm:$0xff]  ;;  %v2372_v9 = vpack.c.bf16 %v516_v6, %v515_v4  ;;  %v517_v10 = vld [vmem:[#allocation7 + $0x10] sm:$0xff]  ;;  %v3118_v15 = vld [vmem:[%s442_s13] sm:$0xff]  ;;  %s2770_s3 = smov 120   ;;  %s2771_s26 = smov 112   ;;  %v3137_v30 = vshrl.u32 %v699_v26, 7 }
  0xc1   : > { %v518_v11 = vld [vmem:[#allocation7 + $0x18] sm:$0xff]  ;;  %2379 = vmatpush3.bf16.msra.mxu1 %v2378_v5  ;;  %v2381_v12 = vpack.c.bf16 %v603_v8, %v602_v7  ;;  %v2236_v16 = vld [vmem:[%s3363_s6] ss:$0 sm:$0xff]  ;;  %s2772_s7 = smov 96   ;;  %v2773_v24 = vmov 1983009808  }
  0xc2   : > { %2373 = vmatpush3.bf16.msra.mxu0 %v2372_v9  ;;  %2380 = vmatprep.subr.bf16.mxu1 %v2766_v0  ;;  %v2375_v13 = vpack.c.bf16 %v518_v11, %v517_v10  ;;  %v514_v14 = vld [vmem:[%s451_s11] sm:$0xff]  ;;  %v2234_v18 = vld [vmem:[%s3361_s4] ss:$0 sm:$0xff]  ;;  %v697_v25 = vunpack.c.l.s4 %v2773_v24  ;;  %v2774_v27 = vmov 1934713408   ;;  %vm1124_vm2 = vcmask 64512  }
  0xc3   : > { %2374 = vmatprep.subr.bf16.mxu0 %v2766_v0  ;;  %v729_v28 = vunpack.c.l.s4 %v2774_v27  ;;  %p510_p0 = scmp.lt.s32.totalorder %s2749_s20, 1  ;;  %s3403_s10 = sld [smem:[#allocation19_spill]]  ;;  %vm1941_vm6 = vcmask 130048   ;;  %vm1943_vm7 = vcmask 195584  }
  0xc4   : > { %v698_v29 = vunpack.c.0.s8 %v697_v25  ;;  %s2775_s13 = smov 16   ;;  %s2776_s27 = smov 8  }
  0xc5   : > { %2382 = vmatpush3.bf16.msra.mxu1 %v2381_v12  ;;  %v730_v33 = vunpack.c.0.s8 %v729_v28  ;;  %s511_s15 = scalar_select %p510_p0, %s2749_s20, 1 }
  0xc6   : > { %2376 = vmatpush3.bf16.msra.mxu0 %v2375_v13  ;;  %2320 = vmatprep.subr.mxu1 %v2768_v1  ;;  %v3144_v34 = vsub.s32 %v698_v29, %v3137_v30  ;;  %s2777_s29 = smov 24   ;;  %s3406_s25 = sld [smem:[#allocation23_spill]] }
  0xc7   : > { %2330 = vmatprep.subr.mxu0 %v2768_v1  ;;  %v3155_v41 = vsub.s32 %v730_v33, %v3137_v30  ;;  %s509_s12 = scalar_lea.vmem [#allocation11], %s3084_s5  ;;  %p3410_p4 = scmp.ne.s32.totalorder %s3395_s8, 0 }
  0xc8   : > { %2318 = vmatmul.mubr.msk.f32.vlgmr.msra.gmra.mrb[0].mxu1 %vm526_vm1, %v514_v14  ;;  %s2076_s17 = sshll.u32 %s509_s12, 4  ;;  %s3309_s17 = int_to_ptr.vmem [resolvable:$true] %s2076_s17 }
  0xc9   : > { %2307 = vmatmul.mubr.msk.f32.vlgmr.msra.gmra.mrb[0].mxu0 %vm526_vm1, %v3118_v15  ;;  %2322 = vmatprep.mubr.msk.f32.mxu1 %vm2767_vm0, %v2768_v1  ;;  %s512_s14 = scalar_lea.vmem %s3403_s10, %s511_s15  ;;  %s2264_s15 = sshll.u32 %s2749_s20, 7 }
  0xca   : > { %2332 = vmatprep.mubr.msk.f32.mxu0 %vm2767_vm0, %v2768_v1  ;;  %s2663_s11 = scalar_lea.vmem %s3309_s17, 128  ;;  %s2778_s20 = smov [#allocation11]  }
  0xcb   : > { %p2664_p2 = scmp.ne.s32.totalorder %s3309_s17, %s2663_s11  ;;  %s2667_s5 = sshll.u32 %s2778_s20, 4  ;;  %s2668_s5 = int_to_ptr.vmem [resolvable:$false] %s2667_s5 }
  0xcc   : > { %s2669_s23 = scalar_lea.vmem %s2668_s5, 256  ;;  %p2670_p13 = scmp.lt.s32.totalorder %s3309_s17, %s2668_s5 }
  0xcd   : > { %p2665_p8 = pnand %p2664_p2, %p3410_p4  ;;  %p2671_p3 = scmp.lt.s32.totalorder %s2669_s23, %s2663_s11 }
  0xcf   : > { %p2666_p1 = pneg %p2665_p8  ;;  %p2672_p5 = por %p2671_p3, %p2670_p13 }
  0xd1   : > { %p2673_p6 = pnand %p2672_p5, %p2666_p1 }
 0x19b   : > { %v680_v17 = vpop.f32.mrb[0].mxu1 }
 0x19c   : > { %v681_v19 = vadd.f32 %v2236_v16, %v680_v17  ;;  %v2319_v20 = vpop.f32.mrb[1].mxu1  ;;  %v596_v21 = vpop.f32.mrb[0].mxu0 }
 0x19d   : > { %v2308_v22 = vpop.f32.mrb[1].mxu0  ;;  %v597_v23 = vadd.f32 %v2234_v18, %v596_v21 }
 0x19e   : > { %837 = vrot.lane.b32.xlu1 %v681_v19, %s2769_s9  ;;  %831 = vrot.lane.b32.xlu0 %v681_v19, %s2770_s3 }
 0x1a2   : > { %834 = vrot.lane.b32.xlu0 %v681_v19, %s2771_s26  ;;  %685 = vrot.lane.b32.xlu1 %v597_v23, %s2770_s3 }
 0x1a6   : > { %688 = vrot.lane.b32.xlu0 %v597_v23, %s2771_s26  ;;  %691 = vrot.lane.b32.xlu1 %v597_v23, %s2769_s9  ;;  %s3407_s9 = sld [smem:[#allocation24_spill]] }
 0x1aa   : > { %976 = vrot.lane.b32.xlu1 %v681_v19, %s2772_s7 }
 0x210   : > { %v3139_v31 = vpop.permute.xlu1 %837  ;;  %v3141_v32 = vpop.permute.xlu0 %831 }
 0x211   : > { %v856_v35 = vcombine.low %v3141_v32, %v3139_v31  ;;  %v857_v36 = vcombine.high %v3141_v32, %v3139_v31 }
 0x213   : > { %v864_v42 = vrot.slane %v856_v35, %v3144_v34  ;;  %v871_v43 = vrot.slane %v857_v36, %v3144_v34 }
 0x214   : > { %v3150_v37 = vpop.permute.xlu0 %834  ;;  %v686_v38 = vpop.permute.xlu1 %685 }
 0x215   : > { %v840_v39 = vcombine.low %v681_v19, %v3150_v37  ;;  %v841_v40 = vcombine.high %v681_v19, %v3150_v37 }
 0x217   : > { %v848_v44 = vrot.slane %v840_v39, %v3144_v34  ;;  %v855_v45 = vrot.slane %v841_v40, %v3144_v34 }
 0x218   : > { %v689_v46 = vpop.permute.xlu0 %688  ;;  %v692_v47 = vpop.permute.xlu1 %691 }
 0x219   : > { %v872_v48 = vcombine.low %v848_v44, %v864_v42  ;;  %v873_v49 = vcombine.high %v848_v44, %v864_v42  ;;  %v888_v50 = vcombine.low %v855_v45, %v871_v43  ;;  %v889_v51 = vcombine.high %v855_v45, %v871_v43 }
 0x21a   : > { %v694_v52 = vcombine.low %v597_v23, %v689_v46  ;;  %v695_v53 = vcombine.high %v597_v23, %v689_v46  ;;  %v710_v54 = vcombine.low %v686_v38, %v692_v47  ;;  %v711_v55 = vcombine.high %v686_v38, %v692_v47 }
 0x21b   : > { %v880_v56 = vrot.slane %v872_v48, %v3155_v41  ;;  %v887_v57 = vrot.slane %v873_v49, %v3155_v41  ;;  %v896_v58 = vrot.slane %v888_v50, %v3155_v41  ;;  %v903_v59 = vrot.slane %v889_v51, %v3155_v41 }
 0x21c   : > { %v702_v60 = vrot.slane %v694_v52, %v3144_v34  ;;  %v709_v61 = vrot.slane %v695_v53, %v3144_v34  ;;  %v718_v62 = vrot.slane %v710_v54, %v3144_v34  ;;  %v725_v63 = vrot.slane %v711_v55, %v3144_v34 }
 0x21d   : > { %v908_v2 = vcombine.low %v880_v56, %v887_v57  ;;  %v2240_v3 = vcombine.high %v880_v56, %v887_v57  ;;  %v924_v4 = vcombine.low %v896_v58, %v903_v59  ;;  %v2241_v5 = vcombine.high %v896_v58, %v903_v59  ;;  %v2252_v59 = vld [vmem:[%s512_s14] ss:$0 sm:$0xff] }
 0x21e   : > { %v726_v6 = vcombine.low %v702_v60, %v718_v62  ;;  %v727_v7 = vcombine.high %v702_v60, %v718_v62  ;;  %v742_v8 = vcombine.low %v709_v61, %v725_v63  ;;  %v743_v9 = vcombine.high %v709_v61, %v725_v63 }
 0x21f   : > { %v915_v10 = vrot.slane %v908_v2, %v3144_v34  ;;  %v923_v11 = vrot.slane %v2240_v3, %v3144_v34  ;;  %v931_v12 = vrot.slane %v924_v4, %v3144_v34  ;;  %v939_v13 = vrot.slane %v2241_v5, %v3144_v34 }
 0x220   : > { %v734_v14 = vrot.slane %v726_v6, %v3155_v41  ;;  %v741_v16 = vrot.slane %v727_v7, %v3155_v41  ;;  %v750_v17 = vrot.slane %v742_v8, %v3155_v41  ;;  %v757_v18 = vrot.slane %v743_v9, %v3155_v41 }
 0x221   : > { %v940_v19 = vcombine.low %v915_v10, %v923_v11  ;;  %v941_v20 = vcombine.high %v915_v10, %v923_v11  ;;  %v956_v21 = vcombine.low %v931_v12, %v939_v13  ;;  %v957_v22 = vcombine.high %v931_v12, %v939_v13 }
 0x222   : > { %v762_v23 = vcombine.low %v734_v14, %v741_v16  ;;  %v2238_v24 = vcombine.high %v734_v14, %v741_v16  ;;  %v778_v25 = vcombine.low %v750_v17, %v757_v18  ;;  %v2239_v27 = vcombine.high %v750_v17, %v757_v18  ;;  %v977_v18 = vpop.permute.xlu1 %976 }
 0x223   : > { %v948_v28 = vrot.slane %v940_v19, %v3155_v41  ;;  %v964_v29 = vrot.slane %v956_v21, %v3155_v41  ;;  %v955_v33 = vrot.slane %v941_v20, %v3155_v41  ;;  %v971_v35 = vrot.slane %v957_v22, %v3155_v41 }
 0x224   : > { %v769_v36 = vrot.slane %v762_v23, %v3144_v34  ;;  %v777_v38 = vrot.slane %v2238_v24, %v3144_v34  ;;  %v785_v39 = vrot.slane %v778_v25, %v3144_v34  ;;  %v793_v40 = vrot.slane %v2239_v27, %v3144_v34 }
 0x225   : > { %v972_v42 = vcombine.low %v948_v28, %v964_v29  ;;  %v974_v43 = vcombine.low %v955_v33, %v971_v35  ;;  %v973_v54 = vcombine.high %v948_v28, %v964_v29  ;;  %v975_v56 = vcombine.high %v955_v33, %v971_v35 }
 0x226   : > { %v794_v44 = vcombine.low %v769_v36, %v777_v38  ;;  %v795_v45 = vcombine.high %v769_v36, %v777_v38  ;;  %v810_v46 = vcombine.low %v785_v39, %v793_v40  ;;  %v811_v47 = vcombine.high %v785_v39, %v793_v40 }
 0x227   : > { %2321 = vmatpush3.xpose.msk.msra.mxu1 %vm1124_vm2, %v972_v42  ;;  %2331 = vmatpush3.xpose.msk.msra.mxu0 %vm1124_vm2, %v974_v43  ;;  %v1443_v58 = vand.u32 127, %v699_v26  ;;  %vm1436_vm3 = vcmp.gt.f32.partialorder %v2252_v59, 0.0 }
 0x228   : > { %2325 = vmatprep.subr.mxu1 %v2768_v1  ;;  %v802_v48 = vrot.slane %v794_v44, %v3155_v41  ;;  %v818_v49 = vrot.slane %v810_v46, %v3155_v41  ;;  %v809_v50 = vrot.slane %v795_v45, %v3155_v41  ;;  %v825_v51 = vrot.slane %v811_v47, %v3155_v41 }
 0x229   : > { %2340 = vmatprep.subr.mxu0 %v2768_v1  ;;  %vm1444_vm4 = vcmp.le.s32.totalorder %v1443_v58, %v3137_v30 }
 0x22a   : > { %v826_v52 = vcombine.low %v802_v48, %v818_v49  ;;  %v828_v53 = vcombine.low %v809_v50, %v825_v51  ;;  %v827_v55 = vcombine.high %v802_v48, %v818_v49  ;;  %v829_v57 = vcombine.high %v809_v50, %v825_v51  ;;  %vm3216_vm5 = vmand %vm1436_vm3, %vm1444_vm4 }
 0x22c   : > { %2323 = vmatmul.mubr.msk.f32.vlgmr.msra.gmra.mrb[2].mxu1 %vm1124_vm2, %v826_v52  ;;  %2333 = vmatmul.mubr.msk.f32.vlgmr.msra.gmra.mrb[2].mxu0 %vm1124_vm2, %v828_v53 }
 0x22d   : > { %2326 = vmatpush3.xpose.msk.msra.mxu1 %vm1124_vm2, %v973_v54  ;;  %2327 = vmatprep.mubr.msk.f32.mxu1 %vm2767_vm0, %v2768_v1 }
 0x22e   : > { %2335 = vmatprep.subr.mxu1 %v2768_v1  ;;  %2342 = vmatprep.mubr.msk.f32.mxu0 %vm2767_vm0, %v2768_v1 }
 0x230   : > { %2328 = vmatmul.mubr.msk.f32.vlgmr.msra.gmra.mrb[4].mxu1 %vm1124_vm2, %v827_v55 }
 0x231   : > { %2336 = vmatpush3.xpose.msk.msra.mxu1 %vm1124_vm2, %v975_v56  ;;  %2337 = vmatprep.mubr.msk.f32.mxu1 %vm2767_vm0, %v2768_v1 }
 0x232   : > { %2345 = vmatprep.subr.mxu1 %v2768_v1 }
 0x234   : > { %2338 = vmatmul.mubr.msk.f32.vlgmr.msra.gmra.mrb[6].mxu1 %vm1124_vm2, %v829_v57 }
 0x235   : > { %2347 = vmatprep.mubr.msk.f32.mxu1 %vm2767_vm0, %v2768_v1 }
 0x2ff   : > { %v1197_v61 = vpop.f32.mrb[2].mxu1  ;;  %v1349_v62 = vpop.f32.mrb[2].mxu0 }
 0x300   : > { %v1448_v63 = vsel %vm3216_vm5, %v1197_v61, -1e+20  ;;  %v1450_v2 = vsel %vm3216_vm5, %v1349_v62, -1e+20  ;;  %v2324_v3 = vpop.f32.mrb[3].mxu1  ;;  %v2334_v4 = vpop.f32.mrb[3].mxu0 }
 0x301   : > { %v1452_v5 = vmul.f32 0.35355338, %v1448_v63  ;;  %v1454_v26 = vmul.f32 0.35355338, %v1450_v2 }
 0x303   : > { %v1273_v6 = vpop.f32.mrb[4].mxu1  ;;  %v1456_v7 = vsel %vm1124_vm2, %v1452_v5, -inf  ;;  %v1462_v12 = vsel %vm1124_vm2, %v1454_v26, -inf }
 0x304   : > { %v1449_v30 = vsel %vm3216_vm5, %v1273_v6, -1e+20  ;;  %1457 = vmax.xlane.f32.xlu0 %v1456_v7  ;;  %v2329_v8 = vpop.f32.mrb[5].mxu1 }
 0x305   : > { %v1453_v9 = vmul.f32 0.35355338, %v1449_v30 }
 0x307   : > { %v1425_v10 = vpop.f32.mrb[6].mxu1  ;;  %v1459_v11 = vsel %vm1124_vm2, %v1453_v9, -inf }
 0x308   : > { %v1451_v13 = vsel %vm3216_vm5, %v1425_v10, -1e+20  ;;  %1460 = vmax.xlane.f32.xlu1 %v1459_v11  ;;  %v2339_v14 = vpop.f32.mrb[7].mxu1  ;;  %1463 = vmax.xlane.f32.xlu0 %v1462_v12 }
 0x309   : > { %v1455_v16 = vmul.f32 0.35355338, %v1451_v13 }
 0x30b   : > { %v1465_v17 = vsel %vm1124_vm2, %v1455_v16, -inf }
 0x30c   : > { %1466 = vmax.xlane.f32.xlu0 %v1465_v17 }
 0x319   : > { %980 = vrot.lane.b32.xlu1 %v3150_v37, %s2772_s7 }
 0x31d   : > { %982 = vrot.lane.b32.xlu1 %v3139_v31, %s2772_s7 }
 0x322   : > { %978 = vrot.lane.b32.xlu0 %v3141_v32, %s2772_s7  ;;  %s3408_s7 = sld [smem:[#allocation25_spill]] }
 0x391   : > { %v1458_v19 = vpop.xlane.xlu0 %1457 }
 0x392   : > { %v1468_v20 = vsub.f32 %v1452_v5, %v1458_v19  ;;  %v1945_v19 = vld [vmem:[#allocation10] sm:$0xff] }
 0x394   : > { %v1472_v21 = vmul.f32 1.442695, %v1468_v20  ;;  %v1946_v20 = vld [vmem:[#allocation10 + $0x8] sm:$0xff] }
 0x395   : > { %v1461_v22 = vpop.xlane.xlu1 %1460  ;;  %v1464_v23 = vpop.xlane.xlu0 %1463 }
 0x396   : > { %2501 = vpow2.f32 %v1472_v21  ;;  %v1469_v24 = vsub.f32 %v1453_v9, %v1461_v22  ;;  %v1470_v25 = vsub.f32 %v1454_v26, %v1464_v23  ;;  %v2384_v21 = vpack.c.bf16 %v1946_v20, %v1945_v19 }
 0x398   : > { %v1474_v27 = vmul.f32 1.442695, %v1469_v24  ;;  %v1476_v28 = vmul.f32 1.442695, %v1470_v25 }
 0x399   : > { %v981_v29 = vpop.permute.xlu1 %980  ;;  %v1467_v33 = vpop.xlane.xlu0 %1466 }
 0x39a   : > { %2503 = vpow2.f32 %v1474_v27  ;;  %v1471_v37 = vsub.f32 %v1455_v16, %v1467_v33  ;;  %v988_v31 = vcombine.low %v977_v18, %v981_v29  ;;  %v989_v35 = vcombine.high %v977_v18, %v981_v29 }
 0x39b   : > { %2505 = vpow2.f32 %v1476_v28 }
 0x39c   : > { %v1478_v36 = vmul.f32 1.442695, %v1471_v37  ;;  %v996_v43 = vrot.slane %v988_v31, %v3144_v34  ;;  %v1003_v44 = vrot.slane %v989_v35, %v3144_v34 }
 0x39d   : > { %v983_v32 = vpop.permute.xlu1 %982  ;;  %v979_v38 = vpop.permute.xlu0 %978 }
 0x39e   : > { %2507 = vpow2.f32 %v1478_v36  ;;  %v1004_v39 = vcombine.low %v979_v38, %v983_v32  ;;  %v1005_v40 = vcombine.high %v979_v38, %v983_v32 }
 0x3a0   : > { %v2502_v42 = vpop.eup %2501  ;;  %v1012_v45 = vrot.slane %v1004_v39, %v3144_v34  ;;  %v1019_v46 = vrot.slane %v1005_v40, %v3144_v34 }
 0x3a1   : > { %v1480_v47 = vsel %vm1124_vm2, %v2502_v42, 0.0 }
 0x3a2   : > { %v1020_v48 = vcombine.low %v996_v43, %v1012_v45  ;;  %v1021_v49 = vcombine.high %v996_v43, %v1012_v45  ;;  %v1036_v50 = vcombine.low %v1003_v44, %v1019_v46  ;;  %v1037_v51 = vcombine.high %v1003_v44, %v1019_v46  ;;  %1481 = vadd.xlane.f32.xlu0 %v1480_v47 }
 0x3a4   : > { %v2504_v52 = vpop.eup %2503  ;;  %v1028_v53 = vrot.slane %v1020_v48, %v3155_v41  ;;  %v1035_v54 = vrot.slane %v1021_v49, %v3155_v41  ;;  %v1044_v55 = vrot.slane %v1036_v50, %v3155_v41  ;;  %v1051_v56 = vrot.slane %v1037_v51, %v3155_v41 }
 0x3a5   : > { %v2506_v57 = vpop.eup %2505  ;;  %v1483_v58 = vsel %vm1124_vm2, %v2504_v52, 0.0 }
 0x3a6   : > { %v1056_v59 = vcombine.low %v1028_v53, %v1035_v54  ;;  %v2242_v60 = vcombine.high %v1028_v53, %v1035_v54  ;;  %v1072_v61 = vcombine.low %v1044_v55, %v1051_v56  ;;  %v2243_v62 = vcombine.high %v1044_v55, %v1051_v56  ;;  %1484 = vadd.xlane.f32.xlu1 %v1483_v58  ;;  %v1947_v56 = vld [vmem:[#allocation10 + $0x10] sm:$0xff] }
 0x3a7   : > { %v1486_v63 = vsel %vm1124_vm2, %v2506_v57, 0.0 }
 0x3a8   : > { %v2508_v2 = vpop.eup %2507  ;;  %v1063_v3 = vrot.slane %v1056_v59, %v3144_v34  ;;  %v1071_v4 = vrot.slane %v2242_v60, %v3144_v34  ;;  %v1079_v5 = vrot.slane %v1072_v61, %v3144_v34  ;;  %v1087_v26 = vrot.slane %v2243_v62, %v3144_v34  ;;  %1487 = vadd.xlane.f32.xlu0 %v1486_v63 }
 0x3a9   : > { %v1489_v6 = vsel %vm1124_vm2, %v2508_v2, 0.0 }
 0x3aa   : > { %v1088_v7 = vcombine.low %v1063_v3, %v1071_v4  ;;  %v1104_v30 = vcombine.low %v1079_v5, %v1087_v26  ;;  %v1089_v8 = vcombine.high %v1063_v3, %v1071_v4  ;;  %v1105_v9 = vcombine.high %v1079_v5, %v1087_v26 }
 0x3ac   : > { %1490 = vadd.xlane.f32.xlu0 %v1489_v6  ;;  %v1096_v10 = vrot.slane %v1088_v7, %v3155_v41  ;;  %v1112_v11 = vrot.slane %v1104_v30, %v3155_v41  ;;  %v1103_v12 = vrot.slane %v1089_v8, %v3155_v41  ;;  %v1119_v13 = vrot.slane %v1105_v9, %v3155_v41 }
 0x3ae   : > { %v1120_v14 = vcombine.low %v1096_v10, %v1112_v11  ;;  %v1121_v16 = vcombine.high %v1096_v10, %v1112_v11  ;;  %v1122_v17 = vcombine.low %v1103_v12, %v1119_v13  ;;  %v1123_v18 = vcombine.high %v1103_v12, %v1119_v13 }
 0x3b0   : > { %2341 = vmatpush3.msra.mxu0 %v1120_v14  ;;  %2346 = vmatpush3.msra.mxu1 %v1121_v16 }
 0x3b1   : > { %2343 = vmatmul.mubr.msk.f32.vlgmr.msra.gmra.mrb[4].mxu0 %vm1124_vm2, %v2502_v42  ;;  %2348 = vmatmul.mubr.msk.f32.vlgmr.msra.gmra.mrb[8].mxu1 %vm1124_vm2, %v2504_v52 }
 0x3b2   : > { %2350 = vmatprep.subr.mxu0 %v2768_v1  ;;  %2355 = vmatprep.subr.mxu1 %v2768_v1 }
 0x3b3   : > { %2351 = vmatpush3.msra.mxu0 %v1122_v17  ;;  %2356 = vmatpush3.msra.mxu1 %v1123_v18 }
 0x3b4   : > { %2352 = vmatprep.mubr.msk.f32.mxu0 %vm2767_vm0, %v2768_v1  ;;  %2357 = vmatprep.mubr.msk.f32.mxu1 %vm2767_vm0, %v2768_v1 }
 0x3b5   : > { %2353 = vmatmul.mubr.msk.f32.vlgmr.msra.gmra.mrb[6].mxu0 %vm1124_vm2, %v2506_v57  ;;  %2358 = vmatmul.mubr.msk.f32.vlgmr.msra.gmra.mrb[10].mxu1 %vm1124_vm2, %v2508_v2  ;;  %v1948_v57 = vld [vmem:[#allocation10 + $0x18] sm:$0xff] }
 0x3b6   : > { %2383 = vmatprep.subr.bf16.mxu0 %v2766_v0  ;;  %2368 = vmatprep.mubr.msk.f32.mxu0 %vm2767_vm0, %v2768_v1  ;;  %v2387_v62 = vpack.c.bf16 %v1948_v57, %v1947_v56 }
 0x3b7   : > { %2385 = vmatpush3.bf16.msra.mxu0 %v2384_v21 }
 0x3b8   : > { %2386 = vmatprep.subr.bf16.mxu0 %v2766_v0 }
 0x3bb   : > { %2388 = vmatpush3.bf16.msra.mxu0 %v2387_v62 }
 0x42f   : > { %v1482_v22 = vpop.xlane.xlu0 %1481 }
 0x430   : > { %2509 = vrcp.f32 %v1482_v22 }
 0x433   : > { %v1485_v24 = vpop.xlane.xlu1 %1484 }
 0x434   : > { %2511 = vrcp.f32 %v1485_v24 }
 0x435   : > { %v1488_v23 = vpop.xlane.xlu0 %1487 }
 0x436   : > { %2513 = vrcp.f32 %v1488_v23 }
 0x439   : > { %v1491_v25 = vpop.xlane.xlu0 %1490 }
 0x43a   : > { %2515 = vrcp.f32 %v1491_v25  ;;  %v2510_v29 = vpop.eup %2509 }
 0x43e   : > { %v2512_v1 = vpop.eup %2511 }
 0x440   : > { %v2514_v31 = vpop.eup %2513 }
 0x444   : > { %v2516_v35 = vpop.eup %2515 }
 0x484   : > { %v1561_v27 = vpop.f32.mrb[4].mxu0  ;;  %v1634_v28 = vpop.f32.mrb[8].mxu1 }
 0x485   : > { %v2344_v33 = vpop.f32.mrb[5].mxu0  ;;  %v2349_v37 = vpop.f32.mrb[9].mxu1  ;;  %v1788_v38 = vmul.f32 %v2510_v29, %v1561_v27  ;;  %v1789_v0 = vmul.f32 %v2512_v1, %v1634_v28 }
 0x488   : > { %v1707_v36 = vpop.f32.mrb[6].mxu0  ;;  %v1780_v32 = vpop.f32.mrb[10].mxu1 }
 0x489   : > { %v1790_v39 = vmul.f32 %v2514_v31, %v1707_v36  ;;  %v1791_v40 = vmul.f32 %v2516_v35, %v1780_v32  ;;  %v2354_v42 = vpop.f32.mrb[7].mxu0  ;;  %v2359_v43 = vpop.f32.mrb[11].mxu1 }
 0x48a   : > { %v2262_v42 = vld [vmem:[%s3408_s7] ss:$0 sm:$0xff] }
 0x48b   : > { %v1792_v44 = vcombine.low %v1788_v38, %v1790_v39  ;;  %v1793_v45 = vcombine.high %v1788_v38, %v1790_v39  ;;  %v1808_v46 = vcombine.low %v1789_v0, %v1791_v40  ;;  %v1809_v47 = vcombine.high %v1789_v0, %v1791_v40 }
 0x48d   : > { %v1800_v48 = vrot.slane %v1792_v44, %v3144_v34  ;;  %v1807_v49 = vrot.slane %v1793_v45, %v3144_v34  ;;  %v1816_v50 = vrot.slane %v1808_v46, %v3144_v34  ;;  %v1823_v51 = vrot.slane %v1809_v47, %v3144_v34 }
 0x48f   : > { %v1824_v52 = vcombine.low %v1800_v48, %v1816_v50  ;;  %v1825_v53 = vcombine.high %v1800_v48, %v1816_v50  ;;  %v1840_v54 = vcombine.low %v1807_v49, %v1823_v51  ;;  %v1841_v55 = vcombine.high %v1807_v49, %v1823_v51 }
 0x491   : > { %v1832_v58 = vrot.slane %v1824_v52, %v3155_v41  ;;  %v1839_v59 = vrot.slane %v1825_v53, %v3155_v41  ;;  %v1848_v60 = vrot.slane %v1840_v54, %v3155_v41  ;;  %v1855_v61 = vrot.slane %v1841_v55, %v3155_v41 }
 0x493   : > { %v1860_v63 = vcombine.low %v1832_v58, %v1839_v59  ;;  %v2257_v2 = vcombine.high %v1832_v58, %v1839_v59  ;;  %v1876_v3 = vcombine.low %v1848_v60, %v1855_v61  ;;  %v2258_v4 = vcombine.high %v1848_v60, %v1855_v61 }
 0x495   : > { %v1867_v5 = vrot.slane %v1860_v63, %v3144_v34  ;;  %v1875_v26 = vrot.slane %v2257_v2, %v3144_v34  ;;  %v1883_v6 = vrot.slane %v1876_v3, %v3144_v34  ;;  %v1891_v7 = vrot.slane %v2258_v4, %v3144_v34 }
 0x497   : > { %v1893_v30 = vcombine.high %v1867_v5, %v1875_v26  ;;  %v1909_v8 = vcombine.high %v1883_v6, %v1891_v7  ;;  %v1892_v9 = vcombine.low %v1867_v5, %v1875_v26  ;;  %v1908_v10 = vcombine.low %v1883_v6, %v1891_v7 }
 0x499   : > { %v1907_v11 = vrot.slane %v1893_v30, %v3155_v41  ;;  %v1923_v12 = vrot.slane %v1909_v8, %v3155_v41  ;;  %v1900_v13 = vrot.slane %v1892_v9, %v3155_v41  ;;  %v1916_v14 = vrot.slane %v1908_v10, %v3155_v41  ;;  %v2259_v41 = vld [vmem:[%s3406_s25] ss:$0 sm:$0xff] }
 0x49b   : > { %v1926_v16 = vcombine.low %v1907_v11, %v1923_v12  ;;  %v1925_v17 = vcombine.high %v1900_v13, %v1916_v14  ;;  %v1927_v18 = vcombine.high %v1907_v11, %v1923_v12  ;;  %v1924_v19 = vcombine.low %v1900_v13, %v1916_v14 }
 0x49d   : > { %1933 = vrot.lane.b32.xlu0 %v1926_v16, %s2775_s13  ;;  %1929 = vrot.lane.b32.xlu1 %v1925_v17, %s2776_s27  ;;  %s3409_s13 = sld [smem:[#allocation26_spill]] }
 0x4a1   : > { %1937 = vrot.lane.b32.xlu1 %v1927_v18, %s2777_s29  ;;  %s2062_s29 = scalar_lea.sflag [#allocation4], %s3081_s24 }
 0x4a3   : > { %s3307_s27 = scalar_lea.hbm %s3409_s13, %s2264_s15 }
 0x50f   : > { %v1930_v34 = vpop.permute.xlu1 %1929  ;;  %v1934_v20 = vpop.permute.xlu0 %1933 }
 0x510   : > { %v1940_v21 = vsel %vm1124_vm2, %v1924_v19, %v1930_v34 }
 0x511   : > { %v1942_v23 = vsel %vm1941_vm6, %v1940_v21, %v1934_v20 }
 0x513   : > { %v1938_v22 = vpop.permute.xlu1 %1937 }
 0x514   : > { %v1944_v24 = vsel %vm1943_vm7, %v1942_v23, %v1938_v22 }
 0x515   : > { %2369 = vmatmul.mubr.msk.f32.vlgmr.msra.gmra.mrb[8].mxu0 %vm526_vm1, %v1944_v24 }
 0x5e8   : > { %v2025_v25 = vpop.f32.mrb[8].mxu0 }
 0x5e9   : > { %v2026_v27 = vadd.f32 %v2259_v41, %v2025_v25  ;;  %v2370_v28 = vpop.f32.mrb[9].mxu0 }
 0x5eb   : > { %v2029_v29 = vadd.f32 %v2026_v27, %v3118_v15  ;;  %v2261_v15 = vld [vmem:[%s3407_s9] ss:$0 sm:$0xff] }
 0x5ed   : > { %v2030_v33 = vsel %vm526_vm1, %v2029_v29, 0.0 }
 0x5ee   : > { %2031 = vadd.xlane.f32.xlu1 %v2030_v33 }
 0x67b   : > { %v2032_v37 = vpop.xlane.xlu1 %2031 }
 0x67c   : > { %v2034_v1 = vmul.f32 0.03125, %v2032_v37 }
 0x67e   : > { %v2035_v31 = vsub.f32 %v2029_v29, %v2034_v1 }
 0x680   : > { %v2036_v35 = vmul.f32 %v2035_v31, %v2035_v31 }
 0x682   : > { %v2037_v36 = vsel %vm526_vm1, %v2036_v35, 0.0 }
 0x683   : > { %2038 = vadd.xlane.f32.xlu0 %v2037_v36 }
 0x710   : > { %v2039_v32 = vpop.xlane.xlu0 %2038 }
 0x711   : > { %v2040_v38 = vmul.f32 0.03125, %v2039_v32 }
 0x713   : > { %v2041_v0 = vadd.f32 1e-05, %v2040_v38 }
 0x715   : > { %2517 = vrsqrt.f32 %v2041_v0 }
 0x71f   : > { %v2518_v39 = vpop.eup %2517 }
 0x720   : > { %v2043_v40 = vmul.f32 %v2518_v39, %v2035_v31 }
 0x722   : > { %v2051_v43 = vmul.f32 %v2261_v15, %v2043_v40 }
 0x724   : > { %v2059_v44 = vadd.f32 %v2262_v42, %v2051_v43 }
 0x726   : > { %2060 = vst.msk [vmem:[%s509_s12] sm:$0xff] %vm526_vm1, %v2059_v44 }
 0x727   : > { %2676 = shalt.err (!%p2673_p6)
}
 0x728   : > { %s2677_s24 = scalar_lea.hbm %s3307_s27, 128  ;;  %s2681_s28 = scalar_lea.hbm %s3409_s13, 256 }
 0x729   : > { %p2678_p10 = scmp.ne.s32.totalorder %s3307_s27, %s2677_s24  ;;  %p2682_p11 = scmp.lt.u32.totalorder %s3307_s27, %s3409_s13 }
 0x72a   : > { %p2683_p9 = scmp.lt.u32.totalorder %s2681_s28, %s2677_s24  ;;  %p2685_p2 = scmp.lt.u32.totalorder %s2677_s24, %s3307_s27 }
 0x72b   : > { %p2679_p7 = pnand %p2678_p10, %p3410_p4 }
 0x72c   : > { %p2684_p0 = por %p2683_p9, %p2682_p11 }
 0x72d   : > { %p2680_p12 = pneg %p2679_p7 }
 0x72e   : > { %p2686_p8 = por %p2685_p2, %p2684_p0 }
 0x730   : > { %p2687_p1 = pnand %p2686_p8, %p2680_p12 }
 0x732   : > { %2690 = shalt.err (!%p2687_p1)
}
 0x733   : > { %2405 = dma.vmem_to_hbm [thread:$0]  (%p3410_p4), %s3309_s17, 128, %s3307_s27, %s2062_s29  }
 0x734 PF: > { %s3411_s26 = sld [smem:[#allocation17_spill]]  ;;  %s3412_s7 = sld [smem:[#allocation18_spill]] }
 0x735   : > { %p3414_p3 = scmp.ge.s32.totalorder %s2757_s22, 2 }
 0x73a   : > { %s2088_s15 = sand.u32 1, %s3411_s26   ;;  %p3413_p13 = scmp.ne.s32.totalorder %s3412_s7, 0 }
 0x73b   : > { %s2089_s12 = scalar_lea.sflag [#allocation4], %s2088_s15 }
 0x73c   : > { %p2425_p5 = pnand %p3414_p3, %p3413_p13 }
 0x73e   : > { %2732 = dma.done.wait (!%p2425_p5), %s2089_s12, 128  }
 0x73f   : > { %2734 = vsyncadd (!%p2425_p5), %s2089_s12, 4294967168  ;;  %s31_s22 = sadd.s32 1, %s2757_s22   ;;  %s3415_s17 = smov %s2741_s18 }
 0x740   : > { %p28_p6 = scmp.ge.s32.totalorder %s31_s22, 4   ;;  %s3416_s18 = smov %s2745_s19 }
 0x741   : > { %s3417_s19 = smov %s3009_s16  ;;  %s3418_s20 = smov %s2753_s21 }
 0x742   : > { %s3419_s21 = smov %s3421_s30  ;;  %30 = sbr.rel (!%p28_p6) target bundleno = 18 (0x12), region = 137 }
 0x749   :  { %2094 = vsyncpa [#allocation3], 1 }
 0x74a   :  { %2096 = vsyncpa [#allocation3 + $0x1], 1 }
 0x74b   :  { %2097 = vsyncpa [#allocation6], 1 }
 0x74c   :  { %2099 = vsyncpa [#allocation6 + $0x1], 1 }
 0x74d   :  { %2100 = vsyncpa [#allocation9], 1 }
 0x74e   :  { %2101 = vsyncpa [#allocation4], 1 }
 0x74f   :  { %2103 = vsyncpa [#allocation4 + $0x1], 1 }

</bundles_post_ra>
